<compile_context>
chip_gen: v5e
topology: v5e:2x2
jax: 0.10.0
libtpu: 0.0.40
codegen_flags: <defaults>
</compile_context>

<pallas_src>
import functools

import jax
import jax.numpy as jnp
from jax import lax
from jax.experimental import pallas as pl
from jax.experimental.pallas import tpu as pltpu


def ann_l3_kernel(x_ref, w1_ref, b1_ref, w2_ref, b2_ref, w3_ref, b3_ref,
                  w4_ref, b4_ref, o_ref, *, sub_b):
    """Fused 4-layer MLP on one (block_b, F) batch tile.

    The tile is processed in `sub_b`-row sub-blocks so that the f32
    intermediates of each sub-block fit in the vreg file even when the batch
    tile is very large (single-grid-step configs).
    """
    compute_dtype = w1_ref.dtype
    # Weights / biases are VMEM-resident (constant index maps); load once.
    w1 = w1_ref[...]
    b1 = b1_ref[...]
    w2 = w2_ref[...]
    b2 = b2_ref[...]
    w3 = w3_ref[...]
    b3 = b3_ref[...]
    w4 = w4_ref[...]
    b4 = b4_ref[...]

    def layers(x):
        # hidden_layer1 + ReLU (f32 accumulation on the MXU)
        h = jnp.dot(x, w1, preferred_element_type=jnp.float32)
        h = jnp.maximum(h + b1, 0.0).astype(compute_dtype)
        # hidden_layer2 + ReLU
        h = jnp.dot(h, w2, preferred_element_type=jnp.float32)
        h = jnp.maximum(h + b2, 0.0).astype(compute_dtype)
        # hidden_layer3 + ReLU
        h = jnp.dot(h, w3, preferred_element_type=jnp.float32)
        h = jnp.maximum(h + b3, 0.0).astype(compute_dtype)
        # predict_layer (no activation)
        return jnp.dot(h, w4, preferred_element_type=jnp.float32) + b4

    n_sub = x_ref.shape[0] // sub_b  # static; block_b is a multiple of sub_b

    if n_sub == 1:
        o_ref[...] = layers(x_ref[...]).astype(o_ref.dtype)
    else:
        def body(s, carry):
            r = pl.multiple_of(s * sub_b, sub_b)
            x = x_ref[pl.ds(r, sub_b), :]
            o_ref[pl.ds(r, sub_b), :] = layers(x).astype(o_ref.dtype)
            return carry

        lax.fori_loop(0, n_sub, body, 0, unroll=n_sub <= 8)


def _round_up(n, m):
    return ((n + m - 1) // m) * m


def _pad2(a, rows, cols):
    return jnp.pad(a, ((0, rows - a.shape[0]), (0, cols - a.shape[1])))


def ann_l3_forward(x, params, *, block_b=None, sub_b=256,
                   compute_dtype=jnp.bfloat16):
    """x: (B, n_feature) f32; params = ((w1,b1),(w2,b2),(w3,b3),(w4,b4)),
    w_i: (in, out), b_i: (1, out). Returns (B, n_output) in x.dtype.

    compute_dtype=jnp.bfloat16 (default) runs the MXU at full rate on
    v5e/v6e/v7x with f32 accumulation; pass jnp.float32 for exact results.
    """
    (w1, b1), (w2, b2), (w3, b3), (w4, b4) = params
    B, F = x.shape
    H1, H2, H3, O = w1.shape[1], w2.shape[1], w3.shape[1], w4.shape[1]
    out_dtype = x.dtype
    compute_dtype = jnp.dtype(compute_dtype)

    # Sublane multiple for the compute dtype (8 rows/vreg, sub-32-bit packs more).
    sub_mult = 8 * (4 // compute_dtype.itemsize)

    # Contraction dim F is streamed with x every grid step -> pad only to the
    # sublane multiple (full-extent blocks keep this legal), not to 128.
    Fp = _round_up(F, sub_mult)
    # Hidden dims: weights are VMEM-resident (fetched ~once), so lane-dense 128
    # padding is essentially free and keeps intermediates lane-aligned.
    H1p = _round_up(H1, 128)
    H2p = _round_up(H2, 128)
    H3p = _round_up(H3, 128)
    # Output dim: no padding; the (block_b, O) full-extent block accepts a masked
    # store, which is cheaper than 16x wider HBM writeback at this width.
    Op = O

    # Batch tiling: single grid step for modest B; 2048-row tiles otherwise so
    # each TensorCore still gets several steps to pipeline (megacore-friendly).
    if block_b is None:
        block_b = _round_up(B, 8) if B <= 4096 else 2048
    block_b = max(8, _round_up(int(block_b), 8))
    sub_b = max(8, _round_up(int(sub_b), 8))
    sub_b = min(sub_b, block_b)
    block_b = _round_up(block_b, sub_b)  # sub_b must divide block_b
    Bp = _round_up(B, block_b)

    # Host-side zero padding + optional bf16 cast of matmul operands.
    # Biases stay f32: they are added to the f32 accumulator.
    xp = _pad2(x, Bp, Fp).astype(compute_dtype)
    w1p = _pad2(w1, Fp, H1p).astype(compute_dtype)
    w2p = _pad2(w2, H1p, H2p).astype(compute_dtype)
    w3p = _pad2(w3, H2p, H3p).astype(compute_dtype)
    w4p = _pad2(w4, H3p, Op).astype(compute_dtype)
    b1p = _pad2(b1, 1, H1p).astype(jnp.float32)
    b2p = _pad2(b2, 1, H2p).astype(jnp.float32)
    b3p = _pad2(b3, 1, H3p).astype(jnp.float32)
    b4p = _pad2(b4, 1, Op).astype(jnp.float32)

    grid = (Bp // block_b,)

    def _nbytes(a):
        return a.size * a.dtype.itemsize

    # Explicit VMEM budget: weights ~single-buffered, x/out double-buffered,
    # plus slack for intermediates / compiler scratch.  Cap at 48 MiB (v7x has
    # 64 MiB physical VMEM; v5e/v6e have 128 MiB).
    weight_bytes = sum(_nbytes(a) for a in
                       (w1p, b1p, w2p, b2p, w3p, b3p, w4p, b4p))
    stream_bytes = 2 * (block_b * Fp * compute_dtype.itemsize
                        + block_b * Op * jnp.dtype(out_dtype).itemsize)
    scratch_slack = 4 * block_b * max(H1p, H2p, H3p, 128)
    vmem_needed = weight_bytes + stream_bytes + scratch_slack
    vmem_limit = int(min(48 * 2**20, max(2 * vmem_needed, 16 * 2**20)))

    flops = 2 * Bp * (Fp * H1p + H1p * H2p + H2p * H3p + H3p * Op)
    bytes_accessed = (sum(_nbytes(a) for a in
                          (xp, w1p, b1p, w2p, b2p, w3p, b3p, w4p, b4p))
                      + Bp * Op * jnp.dtype(out_dtype).itemsize)
    cost = pl.CostEstimate(flops=flops, transcendentals=0,
                           bytes_accessed=bytes_accessed)

    kernel = functools.partial(ann_l3_kernel, sub_b=sub_b)

    def _call(single_buffer_weights):
        def resident(shape):
            # Constant (0,0) index map -> VMEM-resident across all grid steps.
            if single_buffer_weights:
                return pl.BlockSpec(shape, lambda i: (0, 0),
                                    pipeline_mode=pl.Buffered(1))
            return pl.BlockSpec(shape, lambda i: (0, 0))

        return pl.pallas_call(
            kernel,
            out_shape=jax.ShapeDtypeStruct((Bp, Op), out_dtype),
            grid_spec=pltpu.PrefetchScalarGridSpec(
                num_scalar_prefetch=0,
                grid=grid,
                in_specs=[
                    pl.BlockSpec((block_b, Fp), lambda i: (i, 0)),  # x (streamed)
                    resident((Fp, H1p)),   # W1
                    resident((1, H1p)),    # b1
                    resident((H1p, H2p)),  # W2
                    resident((1, H2p)),    # b2
                    resident((H2p, H3p)),  # W3
                    resident((1, H3p)),    # b3
                    resident((H3p, Op)),   # W4 (predict layer)
                    resident((1, Op)),     # b4
                ],
                out_specs=pl.BlockSpec((block_b, Op), lambda i: (i, 0)),
            ),
            compiler_params=pltpu.CompilerParams(
                dimension_semantics=("parallel",),   # batch tiles shard across TCs
                vmem_limit_bytes=vmem_limit,
            ),
            cost_estimate=cost,
        )(xp, w1p, b1p, w2p, b2p, w3p, b3p, w4p, b4p)

    try:
        out_padded = _call(single_buffer_weights=True)
    except Exception:  # noqa: BLE001 - fall back if Buffered(1) is unsupported
        out_padded = _call(single_buffer_weights=False)

    # Strip batch/feature padding (padded rows are garbage and discarded;
    # padded feature columns are exactly zero).
    return out_padded[:B, :O]


def init_linear_params(key, fan_in, fan_out):
    """Deterministic init mimicking torch.nn.Linear: U(-1/sqrt(fan_in), +).
    Weight stored as (fan_in, fan_out) (transposed vs PyTorch), bias (1, fan_out)."""
    kw, kb = jax.random.split(key)
    bound = 1.0 / jnp.sqrt(jnp.float32(fan_in))
    w = jax.random.uniform(kw, (fan_in, fan_out), jnp.float32, -bound, bound)
    b = jax.random.uniform(kb, (1, fan_out), jnp.float32, -bound, bound)
    return w, b


def reference_forward(x, params):
    (w1, b1), (w2, b2), (w3, b3), (w4, b4) = params
    h = jnp.maximum(x @ w1 + b1, 0.0)
    h = jnp.maximum(h @ w2 + b2, 0.0)
    h = jnp.maximum(h @ w3 + b3, 0.0)
    return h @ w4 + b4


if __name__ == "__main__":
    # Small shapes consistent with ANN_L3's forward: x is (batch, n_feature).
    B, n_feature, n_hidden1, n_hidden2, n_hidden3, n_output = 256, 32, 64, 48, 32, 8

    key = jax.random.PRNGKey(0)
    kx, k1, k2, k3, k4 = jax.random.split(key, 5)

    x = jax.random.normal(kx, (B, n_feature), jnp.float32)
    params = (
        init_linear_params(k1, n_feature, n_hidden1),
        init_linear_params(k2, n_hidden1, n_hidden2),
        init_linear_params(k3, n_hidden2, n_hidden3),
        init_linear_params(k4, n_hidden3, n_output),
    )

    ref = reference_forward(x, params)

    # f32 path, single grid step (auto tiling): exact vs reference.
    out_f32 = jax.block_until_ready(
        ann_l3_forward(x, params, compute_dtype=jnp.float32))
    assert out_f32.shape == (B, n_output), out_f32.shape
    assert jnp.allclose(out_f32, ref, atol=1e-5, rtol=1e-5), "f32 mismatch"

    # f32 path exercising the in-kernel row sub-block loop (n_sub = 4).
    out_sub = jax.block_until_ready(
        ann_l3_forward(x, params, sub_b=64, compute_dtype=jnp.float32))
    assert jnp.allclose(out_sub, ref, atol=1e-5, rtol=1e-5), "sub-block mismatch"

    # bf16 operand path (default; f32 accumulation): fast MXU path on v5e/v6e/v7x.
    out_bf16 = jax.block_until_ready(ann_l3_forward(x, params))
    assert out_bf16.shape == (B, n_output), out_bf16.shape
    assert jnp.allclose(out_bf16, ref, atol=1e-1, rtol=1e-1), "bf16 mismatch"

    print("KERNEL_OK")
</pallas_src>

<mosaic_0001>
module attributes {stable_mosaic.version = 11 : i64} {
  func.func @ann_l3_kernel(%arg0: i32, %arg1: memref<256x32xf32, #tpu.memory_space<vmem>>, %arg2: memref<32x128xf32, #tpu.memory_space<vmem>>, %arg3: memref<1x128xf32, #tpu.memory_space<vmem>>, %arg4: memref<128x128xf32, #tpu.memory_space<vmem>>, %arg5: memref<1x128xf32, #tpu.memory_space<vmem>>, %arg6: memref<128x128xf32, #tpu.memory_space<vmem>>, %arg7: memref<1x128xf32, #tpu.memory_space<vmem>>, %arg8: memref<128x8xf32, #tpu.memory_space<vmem>>, %arg9: memref<1x8xf32, #tpu.memory_space<vmem>>, %arg10: memref<256x8xf32, #tpu.memory_space<vmem>>) attributes {dimension_semantics = [#tpu.dimension_semantics<parallel>], iteration_bounds = array<i64: 1>, scalar_prefetch = 0 : i64, scratch_operands = 0 : i64, tpu.core_type = #tpu.core_type<tc>, window_params = [{transform_indices = @transform_0, window_bounds = array<i64: 256, 32>}, {pipeline_mode = #tpu.pipeline_mode<synchronous>, transform_indices = @transform_1, window_bounds = array<i64: 32, 128>}, {pipeline_mode = #tpu.pipeline_mode<synchronous>, transform_indices = @transform_2, window_bounds = array<i64: 1, 128>}, {pipeline_mode = #tpu.pipeline_mode<synchronous>, transform_indices = @transform_3, window_bounds = array<i64: 128, 128>}, {pipeline_mode = #tpu.pipeline_mode<synchronous>, transform_indices = @transform_4, window_bounds = array<i64: 1, 128>}, {pipeline_mode = #tpu.pipeline_mode<synchronous>, transform_indices = @transform_5, window_bounds = array<i64: 128, 128>}, {pipeline_mode = #tpu.pipeline_mode<synchronous>, transform_indices = @transform_6, window_bounds = array<i64: 1, 128>}, {pipeline_mode = #tpu.pipeline_mode<synchronous>, transform_indices = @transform_7, window_bounds = array<i64: 128, 8>}, {pipeline_mode = #tpu.pipeline_mode<synchronous>, transform_indices = @transform_8, window_bounds = array<i64: 1, 8>}, {transform_indices = @transform_9, window_bounds = array<i64: 256, 8>}]} {
    %c0 = arith.constant 0 : index
    %c0_0 = arith.constant 0 : index
    %0 = vector.load %arg2[%c0, %c0_0] : memref<32x128xf32, #tpu.memory_space<vmem>>, vector<32x128xf32>
    %c0_1 = arith.constant 0 : index
    %c0_2 = arith.constant 0 : index
    %1 = vector.load %arg3[%c0_1, %c0_2] : memref<1x128xf32, #tpu.memory_space<vmem>>, vector<1x128xf32>
    %c0_3 = arith.constant 0 : index
    %c0_4 = arith.constant 0 : index
    %2 = vector.load %arg4[%c0_3, %c0_4] : memref<128x128xf32, #tpu.memory_space<vmem>>, vector<128x128xf32>
    %c0_5 = arith.constant 0 : index
    %c0_6 = arith.constant 0 : index
    %3 = vector.load %arg5[%c0_5, %c0_6] : memref<1x128xf32, #tpu.memory_space<vmem>>, vector<1x128xf32>
    %c0_7 = arith.constant 0 : index
    %c0_8 = arith.constant 0 : index
    %4 = vector.load %arg6[%c0_7, %c0_8] : memref<128x128xf32, #tpu.memory_space<vmem>>, vector<128x128xf32>
    %c0_9 = arith.constant 0 : index
    %c0_10 = arith.constant 0 : index
    %5 = vector.load %arg7[%c0_9, %c0_10] : memref<1x128xf32, #tpu.memory_space<vmem>>, vector<1x128xf32>
    %c0_11 = arith.constant 0 : index
    %c0_12 = arith.constant 0 : index
    %6 = vector.load %arg8[%c0_11, %c0_12] : memref<128x8xf32, #tpu.memory_space<vmem>>, vector<128x8xf32>
    %c0_13 = arith.constant 0 : index
    %c0_14 = arith.constant 0 : index
    %7 = vector.load %arg9[%c0_13, %c0_14] : memref<1x8xf32, #tpu.memory_space<vmem>>, vector<1x8xf32>
    %c0_15 = arith.constant 0 : index
    %c0_16 = arith.constant 0 : index
    %8 = vector.load %arg1[%c0_15, %c0_16] : memref<256x32xf32, #tpu.memory_space<vmem>>, vector<256x32xf32>
    %cst = arith.constant dense<0.000000e+00> : vector<256x128xf32>
    %9 = tpu.matmul %8, %0, %cst {dimension_numbers = #tpu.dot_dimension_numbers<[1], [0], [0], [1], [0, 0, 1, 1], [], []>} : vector<256x32xf32>, vector<32x128xf32>, vector<256x128xf32> -> vector<256x128xf32>
    %10 = vector.broadcast %1 : vector<1x128xf32> to vector<256x128xf32>
    %11 = arith.addf %9, %10 : vector<256x128xf32>
    %cst_17 = arith.constant 0.000000e+00 : f32
    %12 = vector.broadcast %cst_17 : f32 to vector<256x128xf32>
    %13 = arith.maximumf %11, %12 : vector<256x128xf32>
    %cst_18 = arith.constant dense<0.000000e+00> : vector<256x128xf32>
    %14 = tpu.matmul %13, %2, %cst_18 {dimension_numbers = #tpu.dot_dimension_numbers<[1], [0], [0], [1], [0, 0, 1, 1], [], []>} : vector<256x128xf32>, vector<128x128xf32>, vector<256x128xf32> -> vector<256x128xf32>
    %15 = vector.broadcast %3 : vector<1x128xf32> to vector<256x128xf32>
    %16 = arith.addf %14, %15 : vector<256x128xf32>
    %cst_19 = arith.constant 0.000000e+00 : f32
    %17 = vector.broadcast %cst_19 : f32 to vector<256x128xf32>
    %18 = arith.maximumf %16, %17 : vector<256x128xf32>
    %cst_20 = arith.constant dense<0.000000e+00> : vector<256x128xf32>
    %19 = tpu.matmul %18, %4, %cst_20 {dimension_numbers = #tpu.dot_dimension_numbers<[1], [0], [0], [1], [0, 0, 1, 1], [], []>} : vector<256x128xf32>, vector<128x128xf32>, vector<256x128xf32> -> vector<256x128xf32>
    %20 = vector.broadcast %5 : vector<1x128xf32> to vector<256x128xf32>
    %21 = arith.addf %19, %20 : vector<256x128xf32>
    %cst_21 = arith.constant 0.000000e+00 : f32
    %22 = vector.broadcast %cst_21 : f32 to vector<256x128xf32>
    %23 = arith.maximumf %21, %22 : vector<256x128xf32>
    %cst_22 = arith.constant dense<0.000000e+00> : vector<256x8xf32>
    %24 = tpu.matmul %23, %6, %cst_22 {dimension_numbers = #tpu.dot_dimension_numbers<[1], [0], [0], [1], [0, 0, 1, 1], [], []>} : vector<256x128xf32>, vector<128x8xf32>, vector<256x8xf32> -> vector<256x8xf32>
    %25 = vector.broadcast %7 : vector<1x8xf32> to vector<256x8xf32>
    %26 = arith.addf %24, %25 : vector<256x8xf32>
    %c0_23 = arith.constant 0 : index
    %c0_24 = arith.constant 0 : index
    %27 = vector.load %arg10[%c0_23, %c0_24] : memref<256x8xf32, #tpu.memory_space<vmem>>, vector<256x8xf32>
    tpu.vector_store %arg10[%c0_23, %c0_24], %26 {strides = array<i32>} : memref<256x8xf32, #tpu.memory_space<vmem>>, vector<256x8xf32>,
    return
  }
  func.func @transform_0(%arg0: i32) -> (i32, i32) {
    %c0_i32 = arith.constant 0 : i32
    %c0_i32_0 = arith.constant 0 : i32
    return %arg0, %c0_i32 : i32, i32
  }
  func.func @transform_1(%arg0: i32) -> (i32, i32) {
    %c0_i32 = arith.constant 0 : i32
    %c0_i32_0 = arith.constant 0 : i32
    %c0_i32_1 = arith.constant 0 : i32
    return %c0_i32, %c0_i32_0 : i32, i32
  }
  func.func @transform_2(%arg0: i32) -> (i32, i32) {
    %c0_i32 = arith.constant 0 : i32
    %c0_i32_0 = arith.constant 0 : i32
    %c0_i32_1 = arith.constant 0 : i32
    return %c0_i32, %c0_i32_0 : i32, i32
  }
  func.func @transform_3(%arg0: i32) -> (i32, i32) {
    %c0_i32 = arith.constant 0 : i32
    %c0_i32_0 = arith.constant 0 : i32
    %c0_i32_1 = arith.constant 0 : i32
    return %c0_i32, %c0_i32_0 : i32, i32
  }
  func.func @transform_4(%arg0: i32) -> (i32, i32) {
    %c0_i32 = arith.constant 0 : i32
    %c0_i32_0 = arith.constant 0 : i32
    %c0_i32_1 = arith.constant 0 : i32
    return %c0_i32, %c0_i32_0 : i32, i32
  }
  func.func @transform_5(%arg0: i32) -> (i32, i32) {
    %c0_i32 = arith.constant 0 : i32
    %c0_i32_0 = arith.constant 0 : i32
    %c0_i32_1 = arith.constant 0 : i32
    return %c0_i32, %c0_i32_0 : i32, i32
  }
  func.func @transform_6(%arg0: i32) -> (i32, i32) {
    %c0_i32 = arith.constant 0 : i32
    %c0_i32_0 = arith.constant 0 : i32
    %c0_i32_1 = arith.constant 0 : i32
    return %c0_i32, %c0_i32_0 : i32, i32
  }
  func.func @transform_7(%arg0: i32) -> (i32, i32) {
    %c0_i32 = arith.constant 0 : i32
    %c0_i32_0 = arith.constant 0 : i32
    %c0_i32_1 = arith.constant 0 : i32
    return %c0_i32, %c0_i32_0 : i32, i32
  }
  func.func @transform_8(%arg0: i32) -> (i32, i32) {
    %c0_i32 = arith.constant 0 : i32
    %c0_i32_0 = arith.constant 0 : i32
    %c0_i32_1 = arith.constant 0 : i32
    return %c0_i32, %c0_i32_0 : i32, i32
  }
  func.func @transform_9(%arg0: i32) -> (i32, i32) {
    %c0_i32 = arith.constant 0 : i32
    %c0_i32_0 = arith.constant 0 : i32
    return %arg0, %c0_i32 : i32, i32
  }
}

module attributes {stable_mosaic.version = 11 : i64} {
  func.func @ann_l3_kernel(%arg0: i32, %arg1: memref<256x32xf32, #tpu.memory_space<vmem>>, %arg2: memref<32x128xf32, #tpu.memory_space<vmem>>, %arg3: memref<1x128xf32, #tpu.memory_space<vmem>>, %arg4: memref<128x128xf32, #tpu.memory_space<vmem>>, %arg5: memref<1x128xf32, #tpu.memory_space<vmem>>, %arg6: memref<128x128xf32, #tpu.memory_space<vmem>>, %arg7: memref<1x128xf32, #tpu.memory_space<vmem>>, %arg8: memref<128x8xf32, #tpu.memory_space<vmem>>, %arg9: memref<1x8xf32, #tpu.memory_space<vmem>>, %arg10: memref<256x8xf32, #tpu.memory_space<vmem>>) attributes {dimension_semantics = [#tpu.dimension_semantics<parallel>], iteration_bounds = array<i64: 1>, scalar_prefetch = 0 : i64, scratch_operands = 0 : i64, tpu.core_type = #tpu.core_type<tc>, window_params = [{transform_indices = @transform_0, window_bounds = array<i64: 256, 32>}, {pipeline_mode = #tpu.pipeline_mode<synchronous>, transform_indices = @transform_1, window_bounds = array<i64: 32, 128>}, {pipeline_mode = #tpu.pipeline_mode<synchronous>, transform_indices = @transform_2, window_bounds = array<i64: 1, 128>}, {pipeline_mode = #tpu.pipeline_mode<synchronous>, transform_indices = @transform_3, window_bounds = array<i64: 128, 128>}, {pipeline_mode = #tpu.pipeline_mode<synchronous>, transform_indices = @transform_4, window_bounds = array<i64: 1, 128>}, {pipeline_mode = #tpu.pipeline_mode<synchronous>, transform_indices = @transform_5, window_bounds = array<i64: 128, 128>}, {pipeline_mode = #tpu.pipeline_mode<synchronous>, transform_indices = @transform_6, window_bounds = array<i64: 1, 128>}, {pipeline_mode = #tpu.pipeline_mode<synchronous>, transform_indices = @transform_7, window_bounds = array<i64: 128, 8>}, {pipeline_mode = #tpu.pipeline_mode<synchronous>, transform_indices = @transform_8, window_bounds = array<i64: 1, 8>}, {transform_indices = @transform_9, window_bounds = array<i64: 256, 8>}]} {
    %c0 = arith.constant 0 : index
    %c0_0 = arith.constant 0 : index
    %0 = vector.load %arg2[%c0, %c0_0] : memref<32x128xf32, #tpu.memory_space<vmem>>, vector<32x128xf32>
    %c0_1 = arith.constant 0 : index
    %c0_2 = arith.constant 0 : index
    %1 = vector.load %arg3[%c0_1, %c0_2] : memref<1x128xf32, #tpu.memory_space<vmem>>, vector<1x128xf32>
    %c0_3 = arith.constant 0 : index
    %c0_4 = arith.constant 0 : index
    %2 = vector.load %arg4[%c0_3, %c0_4] : memref<128x128xf32, #tpu.memory_space<vmem>>, vector<128x128xf32>
    %c0_5 = arith.constant 0 : index
    %c0_6 = arith.constant 0 : index
    %3 = vector.load %arg5[%c0_5, %c0_6] : memref<1x128xf32, #tpu.memory_space<vmem>>, vector<1x128xf32>
    %c0_7 = arith.constant 0 : index
    %c0_8 = arith.constant 0 : index
    %4 = vector.load %arg6[%c0_7, %c0_8] : memref<128x128xf32, #tpu.memory_space<vmem>>, vector<128x128xf32>
    %c0_9 = arith.constant 0 : index
    %c0_10 = arith.constant 0 : index
    %5 = vector.load %arg7[%c0_9, %c0_10] : memref<1x128xf32, #tpu.memory_space<vmem>>, vector<1x128xf32>
    %c0_11 = arith.constant 0 : index
    %c0_12 = arith.constant 0 : index
    %6 = vector.load %arg8[%c0_11, %c0_12] : memref<128x8xf32, #tpu.memory_space<vmem>>, vector<128x8xf32>
    %c0_13 = arith.constant 0 : index
    %c0_14 = arith.constant 0 : index
    %7 = vector.load %arg9[%c0_13, %c0_14] : memref<1x8xf32, #tpu.memory_space<vmem>>, vector<1x8xf32>
    %c0_15 = arith.constant 0 : index
    %c0_16 = arith.constant 0 : index
    %8 = vector.load %arg1[%c0_15, %c0_16] : memref<256x32xf32, #tpu.memory_space<vmem>>, vector<256x32xf32>
    %cst = arith.constant dense<0.000000e+00> : vector<256x128xf32>
    %9 = tpu.matmul %8, %0, %cst {dimension_numbers = #tpu.dot_dimension_numbers<[1], [0], [0], [1], [0, 0, 1, 1], [], []>} : vector<256x32xf32>, vector<32x128xf32>, vector<256x128xf32> -> vector<256x128xf32>
    %10 = vector.broadcast %1 : vector<1x128xf32> to vector<256x128xf32>
    %11 = arith.addf %9, %10 : vector<256x128xf32>
    %cst_17 = arith.constant 0.000000e+00 : f32
    %12 = vector.broadcast %cst_17 : f32 to vector<256x128xf32>
    %13 = arith.maximumf %11, %12 : vector<256x128xf32>
    %cst_18 = arith.constant dense<0.000000e+00> : vector<256x128xf32>
    %14 = tpu.matmul %13, %2, %cst_18 {dimension_numbers = #tpu.dot_dimension_numbers<[1], [0], [0], [1], [0, 0, 1, 1], [], []>} : vector<256x128xf32>, vector<128x128xf32>, vector<256x128xf32> -> vector<256x128xf32>
    %15 = vector.broadcast %3 : vector<1x128xf32> to vector<256x128xf32>
    %16 = arith.addf %14, %15 : vector<256x128xf32>
    %cst_19 = arith.constant 0.000000e+00 : f32
    %17 = vector.broadcast %cst_19 : f32 to vector<256x128xf32>
    %18 = arith.maximumf %16, %17 : vector<256x128xf32>
    %cst_20 = arith.constant dense<0.000000e+00> : vector<256x128xf32>
    %19 = tpu.matmul %18, %4, %cst_20 {dimension_numbers = #tpu.dot_dimension_numbers<[1], [0], [0], [1], [0, 0, 1, 1], [], []>} : vector<256x128xf32>, vector<128x128xf32>, vector<256x128xf32> -> vector<256x128xf32>
    %20 = vector.broadcast %5 : vector<1x128xf32> to vector<256x128xf32>
    %21 = arith.addf %19, %20 : vector<256x128xf32>
    %cst_21 = arith.constant 0.000000e+00 : f32
    %22 = vector.broadcast %cst_21 : f32 to vector<256x128xf32>
    %23 = arith.maximumf %21, %22 : vector<256x128xf32>
    %cst_22 = arith.constant dense<0.000000e+00> : vector<256x8xf32>
    %24 = tpu.matmul %23, %6, %cst_22 {dimension_numbers = #tpu.dot_dimension_numbers<[1], [0], [0], [1], [0, 0, 1, 1], [], []>} : vector<256x128xf32>, vector<128x8xf32>, vector<256x8xf32> -> vector<256x8xf32>
    %25 = vector.broadcast %7 : vector<1x8xf32> to vector<256x8xf32>
    %26 = arith.addf %24, %25 : vector<256x8xf32>
    %c0_23 = arith.constant 0 : index
    %c0_24 = arith.constant 0 : index
    %27 = vector.load %arg10[%c0_23, %c0_24] : memref<256x8xf32, #tpu.memory_space<vmem>>, vector<256x8xf32>
    tpu.vector_store %arg10[%c0_23, %c0_24], %26 {strides = array<i32>} : memref<256x8xf32, #tpu.memory_space<vmem>>, vector<256x8xf32>,
    return
  }
  func.func @transform_0(%arg0: i32) -> (i32, i32) {
    %c0_i32 = arith.constant 0 : i32
    %c0_i32_0 = arith.constant 0 : i32
    return %arg0, %c0_i32 : i32, i32
  }
  func.func @transform_1(%arg0: i32) -> (i32, i32) {
    %c0_i32 = arith.constant 0 : i32
    %c0_i32_0 = arith.constant 0 : i32
    %c0_i32_1 = arith.constant 0 : i32
    return %c0_i32, %c0_i32_0 : i32, i32
  }
  func.func @transform_2(%arg0: i32) -> (i32, i32) {
    %c0_i32 = arith.constant 0 : i32
    %c0_i32_0 = arith.constant 0 : i32
    %c0_i32_1 = arith.constant 0 : i32
    return %c0_i32, %c0_i32_0 : i32, i32
  }
  func.func @transform_3(%arg0: i32) -> (i32, i32) {
    %c0_i32 = arith.constant 0 : i32
    %c0_i32_0 = arith.constant 0 : i32
    %c0_i32_1 = arith.constant 0 : i32
    return %c0_i32, %c0_i32_0 : i32, i32
  }
  func.func @transform_4(%arg0: i32) -> (i32, i32) {
    %c0_i32 = arith.constant 0 : i32
    %c0_i32_0 = arith.constant 0 : i32
    %c0_i32_1 = arith.constant 0 : i32
    return %c0_i32, %c0_i32_0 : i32, i32
  }
  func.func @transform_5(%arg0: i32) -> (i32, i32) {
    %c0_i32 = arith.constant 0 : i32
    %c0_i32_0 = arith.constant 0 : i32
    %c0_i32_1 = arith.constant 0 : i32
    return %c0_i32, %c0_i32_0 : i32, i32
  }
  func.func @transform_6(%arg0: i32) -> (i32, i32) {
    %c0_i32 = arith.constant 0 : i32
    %c0_i32_0 = arith.constant 0 : i32
    %c0_i32_1 = arith.constant 0 : i32
    return %c0_i32, %c0_i32_0 : i32, i32
  }
  func.func @transform_7(%arg0: i32) -> (i32, i32) {
    %c0_i32 = arith.constant 0 : i32
    %c0_i32_0 = arith.constant 0 : i32
    %c0_i32_1 = arith.constant 0 : i32
    return %c0_i32, %c0_i32_0 : i32, i32
  }
  func.func @transform_8(%arg0: i32) -> (i32, i32) {
    %c0_i32 = arith.constant 0 : i32
    %c0_i32_0 = arith.constant 0 : i32
    %c0_i32_1 = arith.constant 0 : i32
    return %c0_i32, %c0_i32_0 : i32, i32
  }
  func.func @transform_9(%arg0: i32) -> (i32, i32) {
    %c0_i32 = arith.constant 0 : i32
    %c0_i32_0 = arith.constant 0 : i32
    return %arg0, %c0_i32 : i32, i32
  }
}

</mosaic_0001>

<bundles_post_ra>
// kernel: tpu_custom_call.1
= control target key start
LH: loop header
LB: loop body
LE: loop exit
PB: predicated region body
PF: predicated region fallthrough
CT: control target
= control target key end

     0   :  { %vm123_vm0 = vcmask 261120   ;;  %vm777_vm1 = vcmask 64512   ;;  %s1460_s1 = inlined_call_operand.vmem [shape: f32[32,128], index: 1, kind: input, shape index: {}]   ;;  %s1461_s0 = inlined_call_operand.vmem [shape: f32[256,32], index: 0, kind: input, shape index: {}]   ;;  %s1462_s2 = inlined_call_operand.vmem [shape: f32[1,128], index: 2, kind: input, shape index: {}]   ;;  %s1463_s3 = inlined_call_operand.vmem [shape: f32[128,128], index: 3, kind: input, shape index: {}]   ;;  %s1464_s4 = inlined_call_operand.vmem [shape: f32[1,128], index: 4, kind: input, shape index: {}]   ;;  %s1465_s5 = inlined_call_operand.vmem [shape: f32[128,128], index: 5, kind: input, shape index: {}]   ;;  %s1466_s6 = inlined_call_operand.vmem [shape: f32[1,128], index: 6, kind: input, shape index: {}]   ;;  %s1467_s7 = inlined_call_operand.vmem [shape: f32[128,8], index: 7, kind: input, shape index: {}]   ;;  %s1468_s8 = inlined_call_operand.vmem [shape: f32[1,8], index: 8, kind: input, shape index: {}]   ;;  %s1469_s9 = inlined_call_operand.vmem [shape: f32[256,8], index: 9, kind: output, shape index: {}]  }
   0x1   :  { %v35_v0 = vld [vmem:[%s1460_s1 + $0x18] sm:$0xff]  ;;  %v34_v1 = vld [vmem:[%s1460_s1 + $0x10] sm:$0xff]  ;;  %v33_v2 = vld [vmem:[%s1460_s1 + $0x8] sm:$0xff] }
   0x2   :  { %232 = vmatpush.msra.mxu0 %v35_v0  ;;  %v32_v3 = vld [vmem:[%s1460_s1] sm:$0xff]  ;;  %v89_v5 = vld [vmem:[%s1461_s0 + $0x8] sm:$0xff]  ;;  %v90_v6 = vld [vmem:[%s1461_s0 + $0x10] sm:$0xff] }
   0x3   :  { %v88_v4 = vld [vmem:[%s1461_s0] sm:$0xff]  ;;  %v91_v7 = vld [vmem:[%s1461_s0 + $0x18] sm:$0xff]  ;;  %v93_v9 = vld [vmem:[%s1461_s0 + $0x28] sm:$0xff] }
   0x4   :  { %233 = vmatpush.msra.mxu0 %v34_v1  ;;  %v92_v8 = vld [vmem:[%s1461_s0 + $0x20] sm:$0xff]  ;;  %v94_v10 = vld [vmem:[%s1461_s0 + $0x30] sm:$0xff]  ;;  %v95_v11 = vld [vmem:[%s1461_s0 + $0x38] sm:$0xff] }
   0x5   :  { %v96_v12 = vld [vmem:[%s1461_s0 + $0x40] sm:$0xff]  ;;  %v52_v13 = vld [vmem:[%s1463_s3 + $0x78] sm:$0xff]  ;;  %v51_v14 = vld [vmem:[%s1463_s3 + $0x70] sm:$0xff] }
   0x6   :  { %234 = vmatpush.msra.mxu0 %v33_v2  ;;  %368 = vmatpush.msra.mxu1 %v52_v13  ;;  %v50_v15 = vld [vmem:[%s1463_s3 + $0x68] sm:$0xff]  ;;  %v49_v17 = vld [vmem:[%s1463_s3 + $0x60] sm:$0xff]  ;;  %v48_v18 = vld [vmem:[%s1463_s3 + $0x58] sm:$0xff] }
   0x7   :  { %v97_v16 = vld [vmem:[%s1461_s0 + $0x48] sm:$0xff]  ;;  %v47_v19 = vld [vmem:[%s1463_s3 + $0x50] sm:$0xff]  ;;  %v45_v22 = vld [vmem:[%s1463_s3 + $0x40] sm:$0xff] }
   0x8   :  { %235 = vmatpush.msra.mxu0 %v32_v3  ;;  %369 = vmatpush.msra.mxu1 %v51_v14  ;;  %v46_v20 = vld [vmem:[%s1463_s3 + $0x48] sm:$0xff]  ;;  %v98_v21 = vld [vmem:[%s1461_s0 + $0x50] sm:$0xff]  ;;  %v44_v23 = vld [vmem:[%s1463_s3 + $0x38] sm:$0xff] }
   0x9   :  { %814 = vmatmul.msk.f32.vlgmr.msra.gmra.mxu0 %vm123_vm0, %v88_v4  ;;  %v43_v24 = vld [vmem:[%s1463_s3 + $0x30] sm:$0xff]  ;;  %v42_v25 = vld [vmem:[%s1463_s3 + $0x28] sm:$0xff]  ;;  %v99_v26 = vld [vmem:[%s1461_s0 + $0x58] sm:$0xff] }
   0xa   :  { %370 = vmatpush.msra.mxu1 %v50_v15  ;;  %v41_v27 = vld [vmem:[%s1463_s3 + $0x20] sm:$0xff]  ;;  %v40_v28 = vld [vmem:[%s1463_s3 + $0x18] sm:$0xff]  ;;  %v39_v29 = vld [vmem:[%s1463_s3 + $0x10] sm:$0xff] }
   0xb   :  { %v100_v30 = vld [vmem:[%s1461_s0 + $0x60] sm:$0xff]  ;;  %v38_v31 = vld [vmem:[%s1463_s3 + $0x8] sm:$0xff]  ;;  %v102_v34 = vld [vmem:[%s1461_s0 + $0x70] sm:$0xff] }
   0xc   :  { %371 = vmatpush.msra.mxu1 %v49_v17  ;;  %v37_v32 = vld [vmem:[%s1463_s3] sm:$0xff]  ;;  %v101_v33 = vld [vmem:[%s1461_s0 + $0x68] sm:$0xff]  ;;  %v103_v35 = vld [vmem:[%s1461_s0 + $0x78] sm:$0xff] }
   0xd   :  { %v1027_v36 = vld [vmem:[%s1462_s2] ss:$0 sm:$0xff]  ;;  %v105_v42 = vld [vmem:[%s1461_s0 + $0x88] sm:$0xff]  ;;  %v106_v46 = vld [vmem:[%s1461_s0 + $0x90] sm:$0xff] }
   0xe   :  { %372 = vmatpush.msra.mxu1 %v48_v18  ;;  %v104_v38 = vld [vmem:[%s1461_s0 + $0x80] sm:$0xff]  ;;  %v107_v50 = vld [vmem:[%s1461_s0 + $0x98] sm:$0xff]  ;;  %v109_v58 = vld [vmem:[%s1461_s0 + $0xa8] sm:$0xff] }
   0xf   :  { %v108_v54 = vld [vmem:[%s1461_s0 + $0xa0] sm:$0xff]  ;;  %v110_v62 = vld [vmem:[%s1461_s0 + $0xb0] sm:$0xff]  ;;  %v111_v2 = vld [vmem:[%s1461_s0 + $0xb8] sm:$0xff] }
  0x10   :  { %373 = vmatpush.msra.mxu1 %v47_v19  ;;  %v68_v13 = vld [vmem:[%s1465_s5 + $0x70] sm:$0xff]  ;;  %v67_v15 = vld [vmem:[%s1465_s5 + $0x68] sm:$0xff]  ;;  %v65_v17 = vld [vmem:[%s1465_s5 + $0x58] sm:$0xff] }
  0x11   :  { %815 = vmatmul.msk.f32.gmra.mxu0 %vm123_vm0, %v89_v5  ;;  %v114_v19 = vld [vmem:[%s1461_s0 + $0xd0] sm:$0xff] }
  0x12   :  { %374 = vmatpush.msra.mxu1 %v46_v20 }
  0x14   :  { %375 = vmatpush.msra.mxu1 %v45_v22 }
  0x16   :  { %376 = vmatpush.msra.mxu1 %v44_v23  ;;  %v63_v23 = vld [vmem:[%s1465_s5 + $0x48] sm:$0xff] }
  0x18   :  { %377 = vmatpush.msra.mxu1 %v43_v24  ;;  %v62_v24 = vld [vmem:[%s1465_s5 + $0x40] sm:$0xff] }
  0x19   :  { %816 = vmatmul.msk.f32.gmra.mxu0 %vm123_vm0, %v90_v6  ;;  %v112_v6 = vld [vmem:[%s1461_s0 + $0xc0] sm:$0xff] }
  0x1a   :  { %378 = vmatpush.msra.mxu1 %v42_v25  ;;  %v61_v25 = vld [vmem:[%s1465_s5 + $0x38] sm:$0xff] }
  0x1c   :  { %379 = vmatpush.msra.mxu1 %v41_v27  ;;  %v115_v27 = vld [vmem:[%s1461_s0 + $0xd8] sm:$0xff] }
  0x1e   :  { %380 = vmatpush.msra.mxu1 %v40_v28 }
  0x20   :  { %381 = vmatpush.msra.mxu1 %v39_v29  ;;  %v60_v29 = vld [vmem:[%s1465_s5 + $0x30] sm:$0xff] }
  0x21   :  { %817 = vmatmul.msk.f32.gmra.mxu0 %vm123_vm0, %v91_v7 }
  0x22   :  { %382 = vmatpush.msra.mxu1 %v38_v31  ;;  %v59_v31 = vld [vmem:[%s1465_s5 + $0x28] sm:$0xff] }
  0x24   :  { %383 = vmatpush.msra.mxu1 %v37_v32  ;;  %v58_v32 = vld [vmem:[%s1465_s5 + $0x20] sm:$0xff] }
  0x29   :  { %818 = vmatmul.msk.f32.gmra.mxu0 %vm123_vm0, %v92_v8 }
  0x31   :  { %819 = vmatmul.msk.f32.gmra.mxu0 %vm123_vm0, %v93_v9  ;;  %v69_v9 = vld [vmem:[%s1465_s5 + $0x78] sm:$0xff] }
  0x32   :  { %516 = vmatpush.msra.mxu2 %v69_v9 }
  0x34   :  { %517 = vmatpush.msra.mxu2 %v68_v13 }
  0x36   :  { %518 = vmatpush.msra.mxu2 %v67_v15 }
  0x39   :  { %820 = vmatmul.msk.f32.gmra.mxu0 %vm123_vm0, %v94_v10 }
  0x41   :  { %821 = vmatmul.msk.f32.gmra.mxu0 %vm123_vm0, %v95_v11  ;;  %v113_v11 = vld [vmem:[%s1461_s0 + $0xc8] sm:$0xff] }
  0x49   :  { %822 = vmatmul.msk.f32.gmra.mxu0 %vm123_vm0, %v96_v12 }
  0x51   :  { %823 = vmatmul.msk.f32.gmra.mxu0 %vm123_vm0, %v97_v16  ;;  %v66_v16 = vld [vmem:[%s1465_s5 + $0x60] sm:$0xff] }
  0x52   :  { %519 = vmatpush.msra.mxu2 %v66_v16 }
  0x54   :  { %520 = vmatpush.msra.mxu2 %v65_v17 }
  0x59   :  { %824 = vmatmul.msk.f32.gmra.mxu0 %vm123_vm0, %v98_v21  ;;  %v64_v21 = vld [vmem:[%s1465_s5 + $0x50] sm:$0xff] }
  0x5a   :  { %521 = vmatpush.msra.mxu2 %v64_v21 }
  0x5c   :  { %522 = vmatpush.msra.mxu2 %v63_v23 }
  0x5e   :  { %523 = vmatpush.msra.mxu2 %v62_v24 }
  0x60   :  { %524 = vmatpush.msra.mxu2 %v61_v25 }
  0x61   :  { %825 = vmatmul.msk.f32.gmra.mxu0 %vm123_vm0, %v99_v26 }
  0x62   :  { %525 = vmatpush.msra.mxu2 %v60_v29 }
  0x64   :  { %526 = vmatpush.msra.mxu2 %v59_v31 }
  0x66   :  { %527 = vmatpush.msra.mxu2 %v58_v32 }
  0x69   :  { %826 = vmatmul.msk.f32.gmra.mxu0 %vm123_vm0, %v100_v30 }
  0x71   :  { %827 = vmatmul.msk.f32.gmra.mxu0 %vm123_vm0, %v101_v33  ;;  %v57_v33 = vld [vmem:[%s1465_s5 + $0x18] sm:$0xff] }
  0x72   :  { %528 = vmatpush.msra.mxu2 %v57_v33 }
  0x79   :  { %828 = vmatmul.msk.f32.gmra.mxu0 %vm123_vm0, %v102_v34 }
  0x81   :  { %829 = vmatmul.msk.f32.gmra.mxu0 %vm123_vm0, %v103_v35  ;;  %v116_v35 = vld [vmem:[%s1461_s0 + $0xe0] sm:$0xff] }
  0x86   :  { %v237_v37 = vpop.f32.mrf.mxu0 }
  0x87   :  { %v238_v39 = vadd.f32 %v1027_v36, %v237_v37 }
  0x89   :  { %830 = vmatmul.msk.f32.gmra.mxu0 %vm123_vm0, %v104_v38  ;;  %v333_v40 = vmax.f32 %v238_v39, 0.0  ;;  %v56_v38 = vld [vmem:[%s1465_s5 + $0x10] sm:$0xff] }
  0x8a   :  { %529 = vmatpush.msra.mxu2 %v56_v38 }
  0x8b   :  { %384 = vmatmul.f32.vlgmr.msra.gmra.mxu1 %v333_v40  ;;  %v55_v40 = vld [vmem:[%s1465_s5 + $0x8] sm:$0xff] }
  0x8c   :  { %530 = vmatpush.msra.mxu2 %v55_v40 }
  0x8e   :  { %v240_v41 = vpop.f32.mrf.mxu0 }
  0x8f   :  { %v241_v43 = vadd.f32 %v1027_v36, %v240_v41  ;;  %v54_v41 = vld [vmem:[%s1465_s5] sm:$0xff] }
  0x90   :  { %531 = vmatpush.msra.mxu2 %v54_v41 }
  0x91   :  { %831 = vmatmul.msk.f32.gmra.mxu0 %vm123_vm0, %v105_v42  ;;  %v334_v44 = vmax.f32 %v241_v43, 0.0  ;;  %v117_v43 = vld [vmem:[%s1461_s0 + $0xe8] sm:$0xff] }
  0x93   :  { %387 = vmatmul.f32.gmra.mxu1 %v334_v44 }
  0x96   :  { %v243_v45 = vpop.f32.mrf.mxu0 }
  0x97   :  { %v244_v47 = vadd.f32 %v1027_v36, %v243_v45 }
  0x99   :  { %832 = vmatmul.msk.f32.gmra.mxu0 %vm123_vm0, %v106_v46  ;;  %v335_v48 = vmax.f32 %v244_v47, 0.0  ;;  %v118_v47 = vld [vmem:[%s1461_s0 + $0xf0] sm:$0xff] }
  0x9b   :  { %390 = vmatmul.f32.gmra.mxu1 %v335_v48 }
  0x9e   :  { %v246_v49 = vpop.f32.mrf.mxu0 }
  0x9f   :  { %v247_v51 = vadd.f32 %v1027_v36, %v246_v49 }
  0xa1   :  { %833 = vmatmul.msk.f32.gmra.mxu0 %vm123_vm0, %v107_v50  ;;  %v336_v52 = vmax.f32 %v247_v51, 0.0  ;;  %v119_v51 = vld [vmem:[%s1461_s0 + $0xf8] sm:$0xff] }
  0xa3   :  { %393 = vmatmul.f32.gmra.mxu1 %v336_v52 }
  0xa6   :  { %v249_v53 = vpop.f32.mrf.mxu0 }
  0xa7   :  { %v250_v55 = vadd.f32 %v1027_v36, %v249_v53 }
  0xa9   :  { %834 = vmatmul.msk.f32.gmra.mxu0 %vm123_vm0, %v108_v54  ;;  %v337_v56 = vmax.f32 %v250_v55, 0.0  ;;  %v1160_v54 = vld [vmem:[%s1464_s4] ss:$0 sm:$0xff] }
  0xab   :  { %396 = vmatmul.f32.gmra.mxu1 %v337_v56 }
  0xae   :  { %v252_v57 = vpop.f32.mrf.mxu0 }
  0xaf   :  { %v253_v59 = vadd.f32 %v1027_v36, %v252_v57 }
  0xb1   :  { %835 = vmatmul.msk.f32.gmra.mxu0 %vm123_vm0, %v109_v58  ;;  %v338_v60 = vmax.f32 %v253_v59, 0.0 }
  0xb3   :  { %399 = vmatmul.f32.gmra.mxu1 %v338_v60 }
  0xb6   :  { %v255_v61 = vpop.f32.mrf.mxu0 }
  0xb7   :  { %v256_v63 = vadd.f32 %v1027_v36, %v255_v61 }
  0xb9   :  { %836 = vmatmul.msk.f32.gmra.mxu0 %vm123_vm0, %v110_v62  ;;  %v339_v0 = vmax.f32 %v256_v63, 0.0 }
  0xbb   :  { %402 = vmatmul.f32.gmra.mxu1 %v339_v0 }
  0xbe   :  { %v258_v1 = vpop.f32.mrf.mxu0 }
  0xbf   :  { %v259_v3 = vadd.f32 %v1027_v36, %v258_v1 }
  0xc1   :  { %837 = vmatmul.msk.f32.gmra.mxu0 %vm123_vm0, %v111_v2  ;;  %v340_v4 = vmax.f32 %v259_v3, 0.0 }
  0xc3   :  { %405 = vmatmul.f32.gmra.mxu1 %v340_v4 }
  0xc6   :  { %v261_v5 = vpop.f32.mrf.mxu0 }
  0xc7   :  { %v262_v7 = vadd.f32 %v1027_v36, %v261_v5 }
  0xc9   :  { %v341_v8 = vmax.f32 %v262_v7, 0.0  ;;  %838 = vmatmul.msk.f32.gmra.mxu0 %vm123_vm0, %v112_v6 }
  0xcb   :  { %408 = vmatmul.f32.gmra.mxu1 %v341_v8 }
  0xce   :  { %v264_v10 = vpop.f32.mrf.mxu0 }
  0xcf   :  { %v265_v12 = vadd.f32 %v1027_v36, %v264_v10 }
  0xd1   :  { %v342_v14 = vmax.f32 %v265_v12, 0.0  ;;  %839 = vmatmul.msk.f32.gmra.mxu0 %vm123_vm0, %v113_v11 }
  0xd3   :  { %411 = vmatmul.f32.gmra.mxu1 %v342_v14 }
  0xd6   :  { %v267_v18 = vpop.f32.mrf.mxu0 }
  0xd7   :  { %v268_v20 = vadd.f32 %v1027_v36, %v267_v18 }
  0xd9   :  { %v343_v22 = vmax.f32 %v268_v20, 0.0  ;;  %840 = vmatmul.msk.f32.gmra.mxu0 %vm123_vm0, %v114_v19 }
  0xdb   :  { %414 = vmatmul.f32.gmra.mxu1 %v343_v22 }
  0xde   :  { %v270_v26 = vpop.f32.mrf.mxu0 }
  0xdf   :  { %v271_v28 = vadd.f32 %v1027_v36, %v270_v26 }
  0xe1   :  { %v344_v30 = vmax.f32 %v271_v28, 0.0  ;;  %841 = vmatmul.msk.f32.gmra.mxu0 %vm123_vm0, %v115_v27 }
  0xe3   :  { %417 = vmatmul.f32.gmra.mxu1 %v344_v30 }
  0xe6   :  { %v273_v34 = vpop.f32.mrf.mxu0 }
  0xe7   :  { %v274_v37 = vadd.f32 %v1027_v36, %v273_v34 }
  0xe9   :  { %v345_v39 = vmax.f32 %v274_v37, 0.0  ;;  %842 = vmatmul.msk.f32.gmra.mxu0 %vm123_vm0, %v116_v35 }
  0xeb   :  { %420 = vmatmul.f32.gmra.mxu1 %v345_v39 }
  0xee   :  { %v276_v42 = vpop.f32.mrf.mxu0 }
  0xef   :  { %v277_v44 = vadd.f32 %v1027_v36, %v276_v42 }
  0xf1   :  { %v346_v45 = vmax.f32 %v277_v44, 0.0  ;;  %843 = vmatmul.msk.f32.gmra.mxu0 %vm123_vm0, %v117_v43 }
  0xf3   :  { %423 = vmatmul.f32.gmra.mxu1 %v346_v45 }
  0xf6   :  { %v279_v46 = vpop.f32.mrf.mxu0 }
  0xf7   :  { %v280_v48 = vadd.f32 %v1027_v36, %v279_v46 }
  0xf9   :  { %v347_v49 = vmax.f32 %v280_v48, 0.0  ;;  %844 = vmatmul.msk.f32.gmra.mxu0 %vm123_vm0, %v118_v47 }
  0xfb   :  { %426 = vmatmul.f32.gmra.mxu1 %v347_v49 }
  0xfe   :  { %v282_v50 = vpop.f32.mrf.mxu0 }
  0xff   :  { %v283_v52 = vadd.f32 %v1027_v36, %v282_v50 }
 0x101   :  { %v348_v53 = vmax.f32 %v283_v52, 0.0  ;;  %845 = vmatmul.msk.f32.gmra.mxu0 %vm123_vm0, %v119_v51  ;;  %v86_v52 = vld [vmem:[%s1467_s7 + $0x78] sm:$0xff] }
 0x102   :  { %664 = vmatpush.msra.mxu3 %v86_v52 }
 0x103   :  { %429 = vmatmul.f32.gmra.mxu1 %v348_v53 }
 0x106   :  { %v285_v55 = vpop.f32.mrf.mxu0 }
 0x107   :  { %v286_v56 = vadd.f32 %v1027_v36, %v285_v55 }
 0x108   :  { %v385_v57 = vpop.f32.mrf.mxu1 }
 0x109   :  { %v349_v58 = vmax.f32 %v286_v56, 0.0  ;;  %v386_v59 = vadd.f32 %v1160_v54, %v385_v57  ;;  %v85_v56 = vld [vmem:[%s1467_s7 + $0x70] sm:$0xff] }
 0x10a   :  { %665 = vmatpush.msra.mxu3 %v85_v56 }
 0x10b   :  { %432 = vmatmul.f32.gmra.mxu1 %v349_v58  ;;  %v481_v60 = vmax.f32 %v386_v59, 0.0 }
 0x10d   :  { %532 = vmatmul.f32.vlgmr.msra.gmra.mxu2 %v481_v60  ;;  %v84_v60 = vld [vmem:[%s1467_s7 + $0x68] sm:$0xff] }
 0x10e   :  { %v288_v61 = vpop.f32.mrf.mxu0  ;;  %666 = vmatpush.msra.mxu3 %v84_v60 }
 0x10f   :  { %v289_v62 = vadd.f32 %v1027_v36, %v288_v61 }
 0x110   :  { %v388_v63 = vpop.f32.mrf.mxu1 }
 0x111   :  { %v350_v0 = vmax.f32 %v289_v62, 0.0  ;;  %v389_v1 = vadd.f32 %v1160_v54, %v388_v63  ;;  %v83_v62 = vld [vmem:[%s1467_s7 + $0x60] sm:$0xff]  ;;  %v82_v63 = vld [vmem:[%s1467_s7 + $0x58] sm:$0xff] }
 0x112   :  { %667 = vmatpush.msra.mxu3 %v83_v62 }
 0x113   :  { %435 = vmatmul.f32.gmra.mxu1 %v350_v0  ;;  %v482_v2 = vmax.f32 %v389_v1, 0.0 }
 0x114   :  { %668 = vmatpush.msra.mxu3 %v82_v63 }
 0x115   :  { %535 = vmatmul.f32.gmra.mxu2 %v482_v2  ;;  %v81_v2 = vld [vmem:[%s1467_s7 + $0x50] sm:$0xff] }
 0x116   :  { %v291_v3 = vpop.f32.mrf.mxu0  ;;  %669 = vmatpush.msra.mxu3 %v81_v2 }
 0x117   :  { %v292_v4 = vadd.f32 %v1027_v36, %v291_v3 }
 0x118   :  { %v391_v5 = vpop.f32.mrf.mxu1 }
 0x119   :  { %v351_v6 = vmax.f32 %v292_v4, 0.0  ;;  %v392_v7 = vadd.f32 %v1160_v54, %v391_v5 }
 0x11b   :  { %438 = vmatmul.f32.gmra.mxu1 %v351_v6  ;;  %v483_v8 = vmax.f32 %v392_v7, 0.0  ;;  %v80_v6 = vld [vmem:[%s1467_s7 + $0x48] sm:$0xff] }
 0x11c   :  { %670 = vmatpush.msra.mxu3 %v80_v6 }
 0x11d   :  { %538 = vmatmul.f32.gmra.mxu2 %v483_v8  ;;  %v79_v8 = vld [vmem:[%s1467_s7 + $0x40] sm:$0xff] }
 0x11e   :  { %v294_v9 = vpop.f32.mrf.mxu0  ;;  %671 = vmatpush.msra.mxu3 %v79_v8 }
 0x11f   :  { %v295_v10 = vadd.f32 %v1027_v36, %v294_v9  ;;  %v78_v9 = vld [vmem:[%s1467_s7 + $0x38] sm:$0xff] }
 0x120   :  { %v394_v11 = vpop.f32.mrf.mxu1  ;;  %672 = vmatpush.msra.mxu3 %v78_v9 }
 0x121   :  { %v352_v12 = vmax.f32 %v295_v10, 0.0  ;;  %v395_v13 = vadd.f32 %v1160_v54, %v394_v11 }
 0x123   :  { %441 = vmatmul.f32.gmra.mxu1 %v352_v12  ;;  %v484_v14 = vmax.f32 %v395_v13, 0.0  ;;  %v77_v12 = vld [vmem:[%s1467_s7 + $0x30] sm:$0xff] }
 0x124   :  { %673 = vmatpush.msra.mxu3 %v77_v12 }
 0x125   :  { %541 = vmatmul.f32.gmra.mxu2 %v484_v14 }
 0x126   :  { %v297_v15 = vpop.f32.mrf.mxu0 }
 0x127   :  { %v298_v16 = vadd.f32 %v1027_v36, %v297_v15 }
 0x128   :  { %v397_v17 = vpop.f32.mrf.mxu1 }
 0x129   :  { %v353_v18 = vmax.f32 %v298_v16, 0.0  ;;  %v398_v19 = vadd.f32 %v1160_v54, %v397_v17  ;;  %v76_v16 = vld [vmem:[%s1467_s7 + $0x28] sm:$0xff] }
 0x12a   :  { %674 = vmatpush.msra.mxu3 %v76_v16 }
 0x12b   :  { %444 = vmatmul.f32.gmra.mxu1 %v353_v18  ;;  %v485_v20 = vmax.f32 %v398_v19, 0.0  ;;  %v75_v18 = vld [vmem:[%s1467_s7 + $0x20] sm:$0xff]  ;;  %v74_v19 = vld [vmem:[%s1467_s7 + $0x18] sm:$0xff] }
 0x12c   :  { %675 = vmatpush.msra.mxu3 %v75_v18 }
 0x12d   :  { %544 = vmatmul.f32.gmra.mxu2 %v485_v20 }
 0x12e   :  { %v300_v21 = vpop.f32.mrf.mxu0  ;;  %676 = vmatpush.msra.mxu3 %v74_v19 }
 0x12f   :  { %v301_v22 = vadd.f32 %v1027_v36, %v300_v21 }
 0x130   :  { %v400_v23 = vpop.f32.mrf.mxu1 }
 0x131   :  { %v354_v24 = vmax.f32 %v301_v22, 0.0  ;;  %v401_v25 = vadd.f32 %v1160_v54, %v400_v23  ;;  %v73_v22 = vld [vmem:[%s1467_s7 + $0x10] sm:$0xff] }
 0x132   :  { %677 = vmatpush.msra.mxu3 %v73_v22 }
 0x133   :  { %447 = vmatmul.f32.gmra.mxu1 %v354_v24  ;;  %v486_v26 = vmax.f32 %v401_v25, 0.0 }
 0x135   :  { %547 = vmatmul.f32.gmra.mxu2 %v486_v26  ;;  %v72_v26 = vld [vmem:[%s1467_s7 + $0x8] sm:$0xff] }
 0x136   :  { %v303_v27 = vpop.f32.mrf.mxu0  ;;  %678 = vmatpush.msra.mxu3 %v72_v26 }
 0x137   :  { %v304_v28 = vadd.f32 %v1027_v36, %v303_v27 }
 0x138   :  { %v403_v29 = vpop.f32.mrf.mxu1 }
 0x139   :  { %v355_v30 = vmax.f32 %v304_v28, 0.0  ;;  %v404_v31 = vadd.f32 %v1160_v54, %v403_v29  ;;  %v71_v28 = vld [vmem:[%s1467_s7] sm:$0xff] }
 0x13a   :  { %679 = vmatpush.msra.mxu3 %v71_v28 }
 0x13b   :  { %450 = vmatmul.f32.gmra.mxu1 %v355_v30  ;;  %v487_v32 = vmax.f32 %v404_v31, 0.0 }
 0x13d   :  { %550 = vmatmul.f32.gmra.mxu2 %v487_v32 }
 0x13e   :  { %v306_v33 = vpop.f32.mrf.mxu0 }
 0x13f   :  { %v307_v34 = vadd.f32 %v1027_v36, %v306_v33 }
 0x140   :  { %v406_v35 = vpop.f32.mrf.mxu1 }
 0x141   :  { %v356_v37 = vmax.f32 %v307_v34, 0.0  ;;  %v407_v38 = vadd.f32 %v1160_v54, %v406_v35 }
 0x143   :  { %453 = vmatmul.f32.gmra.mxu1 %v356_v37  ;;  %v488_v39 = vmax.f32 %v407_v38, 0.0 }
 0x145   :  { %553 = vmatmul.f32.gmra.mxu2 %v488_v39 }
 0x146   :  { %v309_v40 = vpop.f32.mrf.mxu0 }
 0x147   :  { %v310_v41 = vadd.f32 %v1027_v36, %v309_v40 }
 0x148   :  { %v409_v42 = vpop.f32.mrf.mxu1 }
 0x149   :  { %v357_v43 = vmax.f32 %v310_v41, 0.0  ;;  %v410_v44 = vadd.f32 %v1160_v54, %v409_v42 }
 0x14b   :  { %v489_v45 = vmax.f32 %v410_v44, 0.0  ;;  %456 = vmatmul.f32.gmra.mxu1 %v357_v43 }
 0x14d   :  { %556 = vmatmul.f32.gmra.mxu2 %v489_v45  ;;  %v1246_v45 = vld [vmem:[%s1466_s6] ss:$0 sm:$0xff] }
 0x14e   :  { %v312_v46 = vpop.f32.mrf.mxu0 }
 0x14f   :  { %v313_v47 = vadd.f32 %v1027_v36, %v312_v46 }
 0x150   :  { %v412_v48 = vpop.f32.mrf.mxu1 }
 0x151   :  { %v358_v49 = vmax.f32 %v313_v47, 0.0  ;;  %v413_v50 = vadd.f32 %v1160_v54, %v412_v48 }
 0x153   :  { %v490_v51 = vmax.f32 %v413_v50, 0.0  ;;  %459 = vmatmul.f32.gmra.mxu1 %v358_v49 }
 0x155   :  { %559 = vmatmul.f32.gmra.mxu2 %v490_v51 }
 0x156   :  { %v315_v53 = vpop.f32.mrf.mxu0 }
 0x157   :  { %v316_v55 = vadd.f32 %v1027_v36, %v315_v53 }
 0x158   :  { %v415_v57 = vpop.f32.mrf.mxu1 }
 0x159   :  { %v359_v58 = vmax.f32 %v316_v55, 0.0  ;;  %v416_v59 = vadd.f32 %v1160_v54, %v415_v57 }
 0x15b   :  { %v491_v61 = vmax.f32 %v416_v59, 0.0  ;;  %462 = vmatmul.f32.gmra.mxu1 %v359_v58 }
 0x15d   :  { %562 = vmatmul.f32.gmra.mxu2 %v491_v61 }
 0x15e   :  { %v318_v0 = vpop.f32.mrf.mxu0 }
 0x15f   :  { %v319_v1 = vadd.f32 %v1027_v36, %v318_v0 }
 0x160   :  { %v418_v3 = vpop.f32.mrf.mxu1 }
 0x161   :  { %v360_v4 = vmax.f32 %v319_v1, 0.0  ;;  %v419_v5 = vadd.f32 %v1160_v54, %v418_v3 }
 0x163   :  { %v492_v7 = vmax.f32 %v419_v5, 0.0  ;;  %465 = vmatmul.f32.gmra.mxu1 %v360_v4 }
 0x165   :  { %565 = vmatmul.f32.gmra.mxu2 %v492_v7 }
 0x166   :  { %v321_v10 = vpop.f32.mrf.mxu0 }
 0x167   :  { %v322_v11 = vadd.f32 %v1027_v36, %v321_v10 }
 0x168   :  { %v421_v13 = vpop.f32.mrf.mxu1 }
 0x169   :  { %v361_v14 = vmax.f32 %v322_v11, 0.0  ;;  %v422_v15 = vadd.f32 %v1160_v54, %v421_v13 }
 0x16b   :  { %v493_v17 = vmax.f32 %v422_v15, 0.0  ;;  %468 = vmatmul.f32.gmra.mxu1 %v361_v14 }
 0x16d   :  { %568 = vmatmul.f32.gmra.mxu2 %v493_v17 }
 0x16e   :  { %v324_v20 = vpop.f32.mrf.mxu0 }
 0x16f   :  { %v325_v21 = vadd.f32 %v1027_v36, %v324_v20 }
 0x170   :  { %v424_v23 = vpop.f32.mrf.mxu1 }
 0x171   :  { %v362_v24 = vmax.f32 %v325_v21, 0.0  ;;  %v425_v25 = vadd.f32 %v1160_v54, %v424_v23 }
 0x173   :  { %v494_v27 = vmax.f32 %v425_v25, 0.0  ;;  %471 = vmatmul.f32.gmra.mxu1 %v362_v24 }
 0x175   :  { %571 = vmatmul.f32.gmra.mxu2 %v494_v27 }
 0x176   :  { %v327_v29 = vpop.f32.mrf.mxu0 }
 0x177   :  { %v328_v30 = vadd.f32 %v1027_v36, %v327_v29 }
 0x178   :  { %v427_v31 = vpop.f32.mrf.mxu1 }
 0x179   :  { %v363_v32 = vmax.f32 %v328_v30, 0.0  ;;  %v428_v33 = vadd.f32 %v1160_v54, %v427_v31 }
 0x17b   :  { %v495_v34 = vmax.f32 %v428_v33, 0.0  ;;  %474 = vmatmul.f32.gmra.mxu1 %v363_v32 }
 0x17d   :  { %574 = vmatmul.f32.gmra.mxu2 %v495_v34 }
 0x17e   :  { %v330_v35 = vpop.f32.mrf.mxu0 }
 0x17f   :  { %v331_v37 = vadd.f32 %v1027_v36, %v330_v35 }
 0x180   :  { %v430_v38 = vpop.f32.mrf.mxu1 }
 0x181   :  { %v364_v39 = vmax.f32 %v331_v37, 0.0  ;;  %v431_v40 = vadd.f32 %v1160_v54, %v430_v38 }
 0x183   :  { %v496_v41 = vmax.f32 %v431_v40, 0.0  ;;  %477 = vmatmul.f32.gmra.mxu1 %v364_v39 }
 0x185   :  { %577 = vmatmul.f32.gmra.mxu2 %v496_v41 }
 0x188   :  { %v433_v42 = vpop.f32.mrf.mxu1 }
 0x189   :  { %v434_v43 = vadd.f32 %v1160_v54, %v433_v42 }
 0x18b   :  { %v497_v44 = vmax.f32 %v434_v43, 0.0 }
 0x18d   :  { %580 = vmatmul.f32.gmra.mxu2 %v497_v44 }
 0x190   :  { %v436_v46 = vpop.f32.mrf.mxu1  ;;  %v533_v47 = vpop.f32.mrf.mxu2 }
 0x191   :  { %v437_v36 = vadd.f32 %v1160_v54, %v436_v46  ;;  %v534_v48 = vadd.f32 %v1246_v45, %v533_v47 }
 0x193   :  { %v498_v49 = vmax.f32 %v437_v36, 0.0  ;;  %v629_v50 = vmax.f32 %v534_v48, 0.0 }
 0x195   :  { %583 = vmatmul.f32.gmra.mxu2 %v498_v49  ;;  %680 = vmatmul.f32.vlgmr.msra.gmra.mxu3 %v629_v50 }
 0x198   :  { %v439_v51 = vpop.f32.mrf.mxu1  ;;  %v536_v52 = vpop.f32.mrf.mxu2 }
 0x199   :  { %v440_v53 = vadd.f32 %v1160_v54, %v439_v51  ;;  %v537_v55 = vadd.f32 %v1246_v45, %v536_v52 }
 0x19b   :  { %v499_v56 = vmax.f32 %v440_v53, 0.0  ;;  %v630_v57 = vmax.f32 %v537_v55, 0.0 }
 0x19d   :  { %586 = vmatmul.f32.gmra.mxu2 %v499_v56  ;;  %683 = vmatmul.f32.gmra.mxu3 %v630_v57 }
 0x1a0   :  { %v442_v58 = vpop.f32.mrf.mxu1  ;;  %v539_v59 = vpop.f32.mrf.mxu2 }
 0x1a1   :  { %v443_v60 = vadd.f32 %v1160_v54, %v442_v58  ;;  %v540_v61 = vadd.f32 %v1246_v45, %v539_v59 }
 0x1a3   :  { %v500_v62 = vmax.f32 %v443_v60, 0.0  ;;  %v631_v63 = vmax.f32 %v540_v61, 0.0 }
 0x1a5   :  { %589 = vmatmul.f32.gmra.mxu2 %v500_v62  ;;  %686 = vmatmul.f32.gmra.mxu3 %v631_v63 }
 0x1a8   :  { %v445_v0 = vpop.f32.mrf.mxu1  ;;  %v542_v1 = vpop.f32.mrf.mxu2 }
 0x1a9   :  { %v446_v2 = vadd.f32 %v1160_v54, %v445_v0  ;;  %v543_v3 = vadd.f32 %v1246_v45, %v542_v1 }
 0x1ab   :  { %v501_v4 = vmax.f32 %v446_v2, 0.0  ;;  %v632_v5 = vmax.f32 %v543_v3, 0.0 }
 0x1ad   :  { %592 = vmatmul.f32.gmra.mxu2 %v501_v4  ;;  %689 = vmatmul.f32.gmra.mxu3 %v632_v5 }
 0x1b0   :  { %v448_v6 = vpop.f32.mrf.mxu1  ;;  %v545_v7 = vpop.f32.mrf.mxu2 }
 0x1b1   :  { %v449_v8 = vadd.f32 %v1160_v54, %v448_v6  ;;  %v546_v9 = vadd.f32 %v1246_v45, %v545_v7 }
 0x1b3   :  { %v502_v10 = vmax.f32 %v449_v8, 0.0  ;;  %v633_v11 = vmax.f32 %v546_v9, 0.0 }
 0x1b5   :  { %595 = vmatmul.f32.gmra.mxu2 %v502_v10  ;;  %692 = vmatmul.f32.gmra.mxu3 %v633_v11 }
 0x1b8   :  { %v451_v12 = vpop.f32.mrf.mxu1  ;;  %v548_v13 = vpop.f32.mrf.mxu2 }
 0x1b9   :  { %v452_v14 = vadd.f32 %v1160_v54, %v451_v12  ;;  %v549_v15 = vadd.f32 %v1246_v45, %v548_v13 }
 0x1bb   :  { %v503_v16 = vmax.f32 %v452_v14, 0.0  ;;  %v634_v17 = vmax.f32 %v549_v15, 0.0 }
 0x1bd   :  { %598 = vmatmul.f32.gmra.mxu2 %v503_v16  ;;  %695 = vmatmul.f32.gmra.mxu3 %v634_v17 }
 0x1c0   :  { %v454_v18 = vpop.f32.mrf.mxu1  ;;  %v551_v19 = vpop.f32.mrf.mxu2 }
 0x1c1   :  { %v455_v20 = vadd.f32 %v1160_v54, %v454_v18  ;;  %v552_v21 = vadd.f32 %v1246_v45, %v551_v19 }
 0x1c3   :  { %v504_v22 = vmax.f32 %v455_v20, 0.0  ;;  %v635_v23 = vmax.f32 %v552_v21, 0.0 }
 0x1c5   :  { %601 = vmatmul.f32.gmra.mxu2 %v504_v22  ;;  %698 = vmatmul.f32.gmra.mxu3 %v635_v23 }
 0x1c8   :  { %v457_v24 = vpop.f32.mrf.mxu1  ;;  %v554_v25 = vpop.f32.mrf.mxu2 }
 0x1c9   :  { %v458_v26 = vadd.f32 %v1160_v54, %v457_v24  ;;  %v555_v27 = vadd.f32 %v1246_v45, %v554_v25 }
 0x1cb   :  { %v505_v28 = vmax.f32 %v458_v26, 0.0  ;;  %v636_v29 = vmax.f32 %v555_v27, 0.0 }
 0x1cd   :  { %604 = vmatmul.f32.gmra.mxu2 %v505_v28  ;;  %701 = vmatmul.f32.gmra.mxu3 %v636_v29 }
 0x1d0   :  { %v460_v30 = vpop.f32.mrf.mxu1  ;;  %v557_v31 = vpop.f32.mrf.mxu2 }
 0x1d1   :  { %v461_v32 = vadd.f32 %v1160_v54, %v460_v30  ;;  %v558_v33 = vadd.f32 %v1246_v45, %v557_v31 }
 0x1d3   :  { %v506_v34 = vmax.f32 %v461_v32, 0.0  ;;  %v637_v35 = vmax.f32 %v558_v33, 0.0 }
 0x1d5   :  { %607 = vmatmul.f32.gmra.mxu2 %v506_v34  ;;  %704 = vmatmul.f32.gmra.mxu3 %v637_v35 }
 0x1d8   :  { %v463_v37 = vpop.f32.mrf.mxu1  ;;  %v560_v38 = vpop.f32.mrf.mxu2 }
 0x1d9   :  { %v464_v39 = vadd.f32 %v1160_v54, %v463_v37  ;;  %v561_v40 = vadd.f32 %v1246_v45, %v560_v38 }
 0x1db   :  { %v507_v41 = vmax.f32 %v464_v39, 0.0  ;;  %v638_v42 = vmax.f32 %v561_v40, 0.0 }
 0x1dd   :  { %610 = vmatmul.f32.gmra.mxu2 %v507_v41  ;;  %707 = vmatmul.f32.gmra.mxu3 %v638_v42 }
 0x1e0   :  { %v466_v43 = vpop.f32.mrf.mxu1  ;;  %v563_v44 = vpop.f32.mrf.mxu2 }
 0x1e1   :  { %v467_v46 = vadd.f32 %v1160_v54, %v466_v43  ;;  %v564_v47 = vadd.f32 %v1246_v45, %v563_v44 }
 0x1e3   :  { %v508_v36 = vmax.f32 %v467_v46, 0.0  ;;  %v639_v48 = vmax.f32 %v564_v47, 0.0 }
 0x1e5   :  { %613 = vmatmul.f32.gmra.mxu2 %v508_v36  ;;  %710 = vmatmul.f32.gmra.mxu3 %v639_v48 }
 0x1e8   :  { %v469_v49 = vpop.f32.mrf.mxu1  ;;  %v566_v50 = vpop.f32.mrf.mxu2 }
 0x1e9   :  { %v470_v51 = vadd.f32 %v1160_v54, %v469_v49  ;;  %v567_v52 = vadd.f32 %v1246_v45, %v566_v50 }
 0x1eb   :  { %v509_v53 = vmax.f32 %v470_v51, 0.0  ;;  %v640_v55 = vmax.f32 %v567_v52, 0.0 }
 0x1ed   :  { %616 = vmatmul.f32.gmra.mxu2 %v509_v53  ;;  %713 = vmatmul.f32.gmra.mxu3 %v640_v55 }
 0x1f0   :  { %v472_v56 = vpop.f32.mrf.mxu1  ;;  %v569_v57 = vpop.f32.mrf.mxu2 }
 0x1f1   :  { %v473_v58 = vadd.f32 %v1160_v54, %v472_v56  ;;  %v570_v59 = vadd.f32 %v1246_v45, %v569_v57 }
 0x1f3   :  { %v510_v60 = vmax.f32 %v473_v58, 0.0  ;;  %v641_v61 = vmax.f32 %v570_v59, 0.0 }
 0x1f5   :  { %619 = vmatmul.f32.gmra.mxu2 %v510_v60  ;;  %716 = vmatmul.f32.gmra.mxu3 %v641_v61 }
 0x1f8   :  { %v475_v62 = vpop.f32.mrf.mxu1  ;;  %v572_v63 = vpop.f32.mrf.mxu2 }
 0x1f9   :  { %v476_v0 = vadd.f32 %v1160_v54, %v475_v62  ;;  %v573_v1 = vadd.f32 %v1246_v45, %v572_v63 }
 0x1fb   :  { %v511_v2 = vmax.f32 %v476_v0, 0.0  ;;  %v642_v3 = vmax.f32 %v573_v1, 0.0 }
 0x1fd   :  { %622 = vmatmul.f32.gmra.mxu2 %v511_v2  ;;  %719 = vmatmul.f32.gmra.mxu3 %v642_v3 }
 0x200   :  { %v478_v4 = vpop.f32.mrf.mxu1  ;;  %v575_v5 = vpop.f32.mrf.mxu2 }
 0x201   :  { %v479_v6 = vadd.f32 %v1160_v54, %v478_v4  ;;  %v576_v7 = vadd.f32 %v1246_v45, %v575_v5  ;;  %v1283_v54 = vld [vmem:[%s1468_s8] ss:$0 sm:$0xff] }
 0x203   :  { %v512_v8 = vmax.f32 %v479_v6, 0.0  ;;  %v643_v9 = vmax.f32 %v576_v7, 0.0 }
 0x205   :  { %625 = vmatmul.f32.gmra.mxu2 %v512_v8  ;;  %722 = vmatmul.f32.gmra.mxu3 %v643_v9 }
 0x208   :  { %v578_v10 = vpop.f32.mrf.mxu2 }
 0x209   :  { %v579_v11 = vadd.f32 %v1246_v45, %v578_v10 }
 0x20b   :  { %v644_v12 = vmax.f32 %v579_v11, 0.0 }
 0x20d   :  { %725 = vmatmul.f32.gmra.mxu3 %v644_v12 }
 0x210   :  { %v581_v13 = vpop.f32.mrf.mxu2 }
 0x211   :  { %v582_v14 = vadd.f32 %v1246_v45, %v581_v13 }
 0x213   :  { %v645_v15 = vmax.f32 %v582_v14, 0.0 }
 0x215   :  { %728 = vmatmul.f32.gmra.mxu3 %v645_v15 }
 0x218   :  { %v584_v16 = vpop.f32.mrf.mxu2  ;;  %v681_v17 = vpop.f32.mrf.mxu3 }
 0x219   :  { %v585_v18 = vadd.f32 %v1246_v45, %v584_v16  ;;  %v682_v19 = vadd.f32 %v1283_v54, %v681_v17 }
 0x21b   :  { %v646_v20 = vmax.f32 %v585_v18, 0.0  ;;  %778 = vst.msk [vmem:[%s1469_s9] sm:$0xff] %vm777_vm1, %v682_v19 }
 0x21d   :  { %731 = vmatmul.f32.gmra.mxu3 %v646_v20 }
 0x220   :  { %v587_v21 = vpop.f32.mrf.mxu2  ;;  %v684_v22 = vpop.f32.mrf.mxu3 }
 0x221   :  { %v588_v23 = vadd.f32 %v1246_v45, %v587_v21  ;;  %v685_v24 = vadd.f32 %v1283_v54, %v684_v22 }
 0x223   :  { %v647_v25 = vmax.f32 %v588_v23, 0.0  ;;  %779 = vst.msk [vmem:[%s1469_s9 + $0x8] sm:$0xff] %vm777_vm1, %v685_v24 }
 0x225   :  { %734 = vmatmul.f32.gmra.mxu3 %v647_v25 }
 0x228   :  { %v590_v26 = vpop.f32.mrf.mxu2  ;;  %v687_v27 = vpop.f32.mrf.mxu3 }
 0x229   :  { %v591_v28 = vadd.f32 %v1246_v45, %v590_v26  ;;  %v688_v29 = vadd.f32 %v1283_v54, %v687_v27 }
 0x22b   :  { %v648_v30 = vmax.f32 %v591_v28, 0.0  ;;  %780 = vst.msk [vmem:[%s1469_s9 + $0x10] sm:$0xff] %vm777_vm1, %v688_v29 }
 0x22d   :  { %737 = vmatmul.f32.gmra.mxu3 %v648_v30 }
 0x230   :  { %v593_v31 = vpop.f32.mrf.mxu2  ;;  %v690_v32 = vpop.f32.mrf.mxu3 }
 0x231   :  { %v594_v33 = vadd.f32 %v1246_v45, %v593_v31  ;;  %v691_v34 = vadd.f32 %v1283_v54, %v690_v32 }
 0x233   :  { %v649_v35 = vmax.f32 %v594_v33, 0.0  ;;  %781 = vst.msk [vmem:[%s1469_s9 + $0x18] sm:$0xff] %vm777_vm1, %v691_v34 }
 0x235   :  { %740 = vmatmul.f32.gmra.mxu3 %v649_v35 }
 0x238   :  { %v596_v37 = vpop.f32.mrf.mxu2  ;;  %v693_v38 = vpop.f32.mrf.mxu3 }
 0x239   :  { %v597_v39 = vadd.f32 %v1246_v45, %v596_v37  ;;  %v694_v40 = vadd.f32 %v1283_v54, %v693_v38 }
 0x23b   :  { %v650_v41 = vmax.f32 %v597_v39, 0.0  ;;  %782 = vst.msk [vmem:[%s1469_s9 + $0x20] sm:$0xff] %vm777_vm1, %v694_v40 }
 0x23d   :  { %743 = vmatmul.f32.gmra.mxu3 %v650_v41 }
 0x240   :  { %v599_v42 = vpop.f32.mrf.mxu2  ;;  %v696_v43 = vpop.f32.mrf.mxu3 }
 0x241   :  { %v600_v44 = vadd.f32 %v1246_v45, %v599_v42  ;;  %v697_v46 = vadd.f32 %v1283_v54, %v696_v43 }
 0x243   :  { %v651_v47 = vmax.f32 %v600_v44, 0.0  ;;  %783 = vst.msk [vmem:[%s1469_s9 + $0x28] sm:$0xff] %vm777_vm1, %v697_v46 }
 0x245   :  { %746 = vmatmul.f32.gmra.mxu3 %v651_v47 }
 0x248   :  { %v602_v36 = vpop.f32.mrf.mxu2  ;;  %v699_v48 = vpop.f32.mrf.mxu3 }
 0x249   :  { %v603_v49 = vadd.f32 %v1246_v45, %v602_v36  ;;  %v700_v50 = vadd.f32 %v1283_v54, %v699_v48 }
 0x24b   :  { %v652_v51 = vmax.f32 %v603_v49, 0.0  ;;  %784 = vst.msk [vmem:[%s1469_s9 + $0x30] sm:$0xff] %vm777_vm1, %v700_v50 }
 0x24d   :  { %749 = vmatmul.f32.gmra.mxu3 %v652_v51 }
 0x250   :  { %v605_v52 = vpop.f32.mrf.mxu2  ;;  %v702_v53 = vpop.f32.mrf.mxu3 }
 0x251   :  { %v606_v55 = vadd.f32 %v1246_v45, %v605_v52  ;;  %v703_v56 = vadd.f32 %v1283_v54, %v702_v53 }
 0x253   :  { %v653_v57 = vmax.f32 %v606_v55, 0.0  ;;  %785 = vst.msk [vmem:[%s1469_s9 + $0x38] sm:$0xff] %vm777_vm1, %v703_v56 }
 0x255   :  { %752 = vmatmul.f32.gmra.mxu3 %v653_v57 }
 0x258   :  { %v608_v58 = vpop.f32.mrf.mxu2  ;;  %v705_v59 = vpop.f32.mrf.mxu3 }
 0x259   :  { %v609_v60 = vadd.f32 %v1246_v45, %v608_v58  ;;  %v706_v61 = vadd.f32 %v1283_v54, %v705_v59 }
 0x25b   :  { %v654_v62 = vmax.f32 %v609_v60, 0.0  ;;  %786 = vst.msk [vmem:[%s1469_s9 + $0x40] sm:$0xff] %vm777_vm1, %v706_v61 }
 0x25d   :  { %755 = vmatmul.f32.gmra.mxu3 %v654_v62 }
 0x260   :  { %v611_v63 = vpop.f32.mrf.mxu2  ;;  %v708_v0 = vpop.f32.mrf.mxu3 }
 0x261   :  { %v612_v1 = vadd.f32 %v1246_v45, %v611_v63  ;;  %v709_v2 = vadd.f32 %v1283_v54, %v708_v0 }
 0x263   :  { %v655_v3 = vmax.f32 %v612_v1, 0.0  ;;  %787 = vst.msk [vmem:[%s1469_s9 + $0x48] sm:$0xff] %vm777_vm1, %v709_v2 }
 0x265   :  { %758 = vmatmul.f32.gmra.mxu3 %v655_v3 }
 0x268   :  { %v614_v4 = vpop.f32.mrf.mxu2  ;;  %v711_v5 = vpop.f32.mrf.mxu3 }
 0x269   :  { %v615_v6 = vadd.f32 %v1246_v45, %v614_v4  ;;  %v712_v7 = vadd.f32 %v1283_v54, %v711_v5 }
 0x26b   :  { %v656_v8 = vmax.f32 %v615_v6, 0.0  ;;  %788 = vst.msk [vmem:[%s1469_s9 + $0x50] sm:$0xff] %vm777_vm1, %v712_v7 }
 0x26d   :  { %761 = vmatmul.f32.gmra.mxu3 %v656_v8 }
 0x270   :  { %v617_v9 = vpop.f32.mrf.mxu2  ;;  %v714_v10 = vpop.f32.mrf.mxu3 }
 0x271   :  { %v618_v11 = vadd.f32 %v1246_v45, %v617_v9  ;;  %v715_v12 = vadd.f32 %v1283_v54, %v714_v10 }
 0x273   :  { %v657_v13 = vmax.f32 %v618_v11, 0.0  ;;  %789 = vst.msk [vmem:[%s1469_s9 + $0x58] sm:$0xff] %vm777_vm1, %v715_v12 }
 0x275   :  { %764 = vmatmul.f32.gmra.mxu3 %v657_v13 }
 0x278   :  { %v620_v14 = vpop.f32.mrf.mxu2  ;;  %v717_v15 = vpop.f32.mrf.mxu3 }
 0x279   :  { %v621_v16 = vadd.f32 %v1246_v45, %v620_v14  ;;  %v718_v17 = vadd.f32 %v1283_v54, %v717_v15 }
 0x27b   :  { %v658_v18 = vmax.f32 %v621_v16, 0.0  ;;  %790 = vst.msk [vmem:[%s1469_s9 + $0x60] sm:$0xff] %vm777_vm1, %v718_v17 }
 0x27d   :  { %767 = vmatmul.f32.gmra.mxu3 %v658_v18 }
 0x280   :  { %v623_v19 = vpop.f32.mrf.mxu2  ;;  %v720_v20 = vpop.f32.mrf.mxu3 }
 0x281   :  { %v624_v21 = vadd.f32 %v1246_v45, %v623_v19  ;;  %v721_v22 = vadd.f32 %v1283_v54, %v720_v20 }
 0x283   :  { %v659_v23 = vmax.f32 %v624_v21, 0.0  ;;  %791 = vst.msk [vmem:[%s1469_s9 + $0x68] sm:$0xff] %vm777_vm1, %v721_v22 }
 0x285   :  { %770 = vmatmul.f32.gmra.mxu3 %v659_v23 }
 0x288   :  { %v626_v24 = vpop.f32.mrf.mxu2  ;;  %v723_v25 = vpop.f32.mrf.mxu3 }
 0x289   :  { %v627_v26 = vadd.f32 %v1246_v45, %v626_v24  ;;  %v724_v27 = vadd.f32 %v1283_v54, %v723_v25 }
 0x28b   :  { %v660_v28 = vmax.f32 %v627_v26, 0.0  ;;  %792 = vst.msk [vmem:[%s1469_s9 + $0x70] sm:$0xff] %vm777_vm1, %v724_v27 }
 0x28d   :  { %773 = vmatmul.f32.gmra.mxu3 %v660_v28 }
 0x290   :  { %v726_v29 = vpop.f32.mrf.mxu3 }
 0x291   :  { %v727_v30 = vadd.f32 %v1283_v54, %v726_v29 }
 0x293   :  { %793 = vst.msk [vmem:[%s1469_s9 + $0x78] sm:$0xff] %vm777_vm1, %v727_v30 }
 0x298   :  { %v729_v31 = vpop.f32.mrf.mxu3 }
 0x299   :  { %v730_v45 = vadd.f32 %v1283_v54, %v729_v31 }
 0x29b   :  { %794 = vst.msk [vmem:[%s1469_s9 + $0x80] sm:$0xff] %vm777_vm1, %v730_v45 }
 0x2a0   :  { %v732_v32 = vpop.f32.mrf.mxu3 }
 0x2a1   :  { %v733_v33 = vadd.f32 %v1283_v54, %v732_v32 }
 0x2a3   :  { %795 = vst.msk [vmem:[%s1469_s9 + $0x88] sm:$0xff] %vm777_vm1, %v733_v33 }
 0x2a8   :  { %v735_v34 = vpop.f32.mrf.mxu3 }
 0x2a9   :  { %v736_v35 = vadd.f32 %v1283_v54, %v735_v34 }
 0x2ab   :  { %796 = vst.msk [vmem:[%s1469_s9 + $0x90] sm:$0xff] %vm777_vm1, %v736_v35 }
 0x2b0   :  { %v738_v37 = vpop.f32.mrf.mxu3 }
 0x2b1   :  { %v739_v38 = vadd.f32 %v1283_v54, %v738_v37 }
 0x2b3   :  { %797 = vst.msk [vmem:[%s1469_s9 + $0x98] sm:$0xff] %vm777_vm1, %v739_v38 }
 0x2b8   :  { %v741_v39 = vpop.f32.mrf.mxu3 }
 0x2b9   :  { %v742_v40 = vadd.f32 %v1283_v54, %v741_v39 }
 0x2bb   :  { %798 = vst.msk [vmem:[%s1469_s9 + $0xa0] sm:$0xff] %vm777_vm1, %v742_v40 }
 0x2c0   :  { %v744_v41 = vpop.f32.mrf.mxu3 }
 0x2c1   :  { %v745_v42 = vadd.f32 %v1283_v54, %v744_v41 }
 0x2c3   :  { %799 = vst.msk [vmem:[%s1469_s9 + $0xa8] sm:$0xff] %vm777_vm1, %v745_v42 }
 0x2c8   :  { %v747_v43 = vpop.f32.mrf.mxu3 }
 0x2c9   :  { %v748_v44 = vadd.f32 %v1283_v54, %v747_v43 }
 0x2cb   :  { %800 = vst.msk [vmem:[%s1469_s9 + $0xb0] sm:$0xff] %vm777_vm1, %v748_v44 }
 0x2d0   :  { %v750_v46 = vpop.f32.mrf.mxu3 }
 0x2d1   :  { %v751_v47 = vadd.f32 %v1283_v54, %v750_v46 }
 0x2d3   :  { %801 = vst.msk [vmem:[%s1469_s9 + $0xb8] sm:$0xff] %vm777_vm1, %v751_v47 }
 0x2d8   :  { %v753_v36 = vpop.f32.mrf.mxu3 }
 0x2d9   :  { %v754_v48 = vadd.f32 %v1283_v54, %v753_v36 }
 0x2db   :  { %802 = vst.msk [vmem:[%s1469_s9 + $0xc0] sm:$0xff] %vm777_vm1, %v754_v48 }
 0x2e0   :  { %v756_v49 = vpop.f32.mrf.mxu3 }
 0x2e1   :  { %v757_v50 = vadd.f32 %v1283_v54, %v756_v49 }
 0x2e3   :  { %803 = vst.msk [vmem:[%s1469_s9 + $0xc8] sm:$0xff] %vm777_vm1, %v757_v50 }
 0x2e8   :  { %v759_v51 = vpop.f32.mrf.mxu3 }
 0x2e9   :  { %v760_v52 = vadd.f32 %v1283_v54, %v759_v51 }
 0x2eb   :  { %804 = vst.msk [vmem:[%s1469_s9 + $0xd0] sm:$0xff] %vm777_vm1, %v760_v52 }
 0x2f0   :  { %v762_v53 = vpop.f32.mrf.mxu3 }
 0x2f1   :  { %v763_v55 = vadd.f32 %v1283_v54, %v762_v53 }
 0x2f3   :  { %805 = vst.msk [vmem:[%s1469_s9 + $0xd8] sm:$0xff] %vm777_vm1, %v763_v55 }
 0x2f8   :  { %v765_v56 = vpop.f32.mrf.mxu3 }
 0x2f9   :  { %v766_v57 = vadd.f32 %v1283_v54, %v765_v56 }
 0x2fb   :  { %806 = vst.msk [vmem:[%s1469_s9 + $0xe0] sm:$0xff] %vm777_vm1, %v766_v57 }
 0x300   :  { %v768_v58 = vpop.f32.mrf.mxu3 }
 0x301   :  { %v769_v59 = vadd.f32 %v1283_v54, %v768_v58 }
 0x303   :  { %807 = vst.msk [vmem:[%s1469_s9 + $0xe8] sm:$0xff] %vm777_vm1, %v769_v59 }
 0x308   :  { %v771_v60 = vpop.f32.mrf.mxu3 }
 0x309   :  { %v772_v61 = vadd.f32 %v1283_v54, %v771_v60 }
 0x30b   :  { %808 = vst.msk [vmem:[%s1469_s9 + $0xf0] sm:$0xff] %vm777_vm1, %v772_v61 }
 0x310   :  { %v774_v62 = vpop.f32.mrf.mxu3 }
 0x311   :  { %v775_v63 = vadd.f32 %v1283_v54, %v774_v62 }
 0x313   :  { %809 = vst.msk [vmem:[%s1469_s9 + $0xf8] sm:$0xff] %vm777_vm1, %v775_v63 }

// kernel: tpu_custom_call.1
= control target key start
LH: loop header
LB: loop body
LE: loop exit
PB: predicated region body
PF: predicated region fallthrough
CT: control target
= control target key end

     0   :  { %vm123_vm0 = vcmask 261120   ;;  %vm777_vm1 = vcmask 64512   ;;  %s1460_s1 = inlined_call_operand.vmem [shape: f32[32,128], index: 1, kind: input, shape index: {}]   ;;  %s1461_s0 = inlined_call_operand.vmem [shape: f32[256,32], index: 0, kind: input, shape index: {}]   ;;  %s1462_s2 = inlined_call_operand.vmem [shape: f32[1,128], index: 2, kind: input, shape index: {}]   ;;  %s1463_s3 = inlined_call_operand.vmem [shape: f32[128,128], index: 3, kind: input, shape index: {}]   ;;  %s1464_s4 = inlined_call_operand.vmem [shape: f32[1,128], index: 4, kind: input, shape index: {}]   ;;  %s1465_s5 = inlined_call_operand.vmem [shape: f32[128,128], index: 5, kind: input, shape index: {}]   ;;  %s1466_s6 = inlined_call_operand.vmem [shape: f32[1,128], index: 6, kind: input, shape index: {}]   ;;  %s1467_s7 = inlined_call_operand.vmem [shape: f32[128,8], index: 7, kind: input, shape index: {}]   ;;  %s1468_s8 = inlined_call_operand.vmem [shape: f32[1,8], index: 8, kind: input, shape index: {}]   ;;  %s1469_s9 = inlined_call_operand.vmem [shape: f32[256,8], index: 9, kind: output, shape index: {}]  }
   0x1   :  { %v35_v0 = vld [vmem:[%s1460_s1 + $0x18] sm:$0xff]  ;;  %v34_v1 = vld [vmem:[%s1460_s1 + $0x10] sm:$0xff]  ;;  %v33_v2 = vld [vmem:[%s1460_s1 + $0x8] sm:$0xff] }
   0x2   :  { %232 = vmatpush.msra.mxu0 %v35_v0  ;;  %v32_v3 = vld [vmem:[%s1460_s1] sm:$0xff]  ;;  %v89_v5 = vld [vmem:[%s1461_s0 + $0x8] sm:$0xff]  ;;  %v90_v6 = vld [vmem:[%s1461_s0 + $0x10] sm:$0xff] }
   0x3   :  { %v88_v4 = vld [vmem:[%s1461_s0] sm:$0xff]  ;;  %v91_v7 = vld [vmem:[%s1461_s0 + $0x18] sm:$0xff]  ;;  %v93_v9 = vld [vmem:[%s1461_s0 + $0x28] sm:$0xff] }
   0x4   :  { %233 = vmatpush.msra.mxu0 %v34_v1  ;;  %v92_v8 = vld [vmem:[%s1461_s0 + $0x20] sm:$0xff]  ;;  %v94_v10 = vld [vmem:[%s1461_s0 + $0x30] sm:$0xff]  ;;  %v95_v11 = vld [vmem:[%s1461_s0 + $0x38] sm:$0xff] }
   0x5   :  { %v96_v12 = vld [vmem:[%s1461_s0 + $0x40] sm:$0xff]  ;;  %v52_v13 = vld [vmem:[%s1463_s3 + $0x78] sm:$0xff]  ;;  %v51_v14 = vld [vmem:[%s1463_s3 + $0x70] sm:$0xff] }
   0x6   :  { %234 = vmatpush.msra.mxu0 %v33_v2  ;;  %368 = vmatpush.msra.mxu1 %v52_v13  ;;  %v50_v15 = vld [vmem:[%s1463_s3 + $0x68] sm:$0xff]  ;;  %v49_v17 = vld [vmem:[%s1463_s3 + $0x60] sm:$0xff]  ;;  %v48_v18 = vld [vmem:[%s1463_s3 + $0x58] sm:$0xff] }
   0x7   :  { %v97_v16 = vld [vmem:[%s1461_s0 + $0x48] sm:$0xff]  ;;  %v47_v19 = vld [vmem:[%s1463_s3 + $0x50] sm:$0xff]  ;;  %v45_v22 = vld [vmem:[%s1463_s3 + $0x40] sm:$0xff] }
   0x8   :  { %235 = vmatpush.msra.mxu0 %v32_v3  ;;  %369 = vmatpush.msra.mxu1 %v51_v14  ;;  %v46_v20 = vld [vmem:[%s1463_s3 + $0x48] sm:$0xff]  ;;  %v98_v21 = vld [vmem:[%s1461_s0 + $0x50] sm:$0xff]  ;;  %v44_v23 = vld [vmem:[%s1463_s3 + $0x38] sm:$0xff] }
   0x9   :  { %814 = vmatmul.msk.f32.vlgmr.msra.gmra.mxu0 %vm123_vm0, %v88_v4  ;;  %v43_v24 = vld [vmem:[%s1463_s3 + $0x30] sm:$0xff]  ;;  %v42_v25 = vld [vmem:[%s1463_s3 + $0x28] sm:$0xff]  ;;  %v99_v26 = vld [vmem:[%s1461_s0 + $0x58] sm:$0xff] }
   0xa   :  { %370 = vmatpush.msra.mxu1 %v50_v15  ;;  %v41_v27 = vld [vmem:[%s1463_s3 + $0x20] sm:$0xff]  ;;  %v40_v28 = vld [vmem:[%s1463_s3 + $0x18] sm:$0xff]  ;;  %v39_v29 = vld [vmem:[%s1463_s3 + $0x10] sm:$0xff] }
   0xb   :  { %v100_v30 = vld [vmem:[%s1461_s0 + $0x60] sm:$0xff]  ;;  %v38_v31 = vld [vmem:[%s1463_s3 + $0x8] sm:$0xff]  ;;  %v102_v34 = vld [vmem:[%s1461_s0 + $0x70] sm:$0xff] }
   0xc   :  { %371 = vmatpush.msra.mxu1 %v49_v17  ;;  %v37_v32 = vld [vmem:[%s1463_s3] sm:$0xff]  ;;  %v101_v33 = vld [vmem:[%s1461_s0 + $0x68] sm:$0xff]  ;;  %v103_v35 = vld [vmem:[%s1461_s0 + $0x78] sm:$0xff] }
   0xd   :  { %v1027_v36 = vld [vmem:[%s1462_s2] ss:$0 sm:$0xff]  ;;  %v105_v42 = vld [vmem:[%s1461_s0 + $0x88] sm:$0xff]  ;;  %v106_v46 = vld [vmem:[%s1461_s0 + $0x90] sm:$0xff] }
   0xe   :  { %372 = vmatpush.msra.mxu1 %v48_v18  ;;  %v104_v38 = vld [vmem:[%s1461_s0 + $0x80] sm:$0xff]  ;;  %v107_v50 = vld [vmem:[%s1461_s0 + $0x98] sm:$0xff]  ;;  %v109_v58 = vld [vmem:[%s1461_s0 + $0xa8] sm:$0xff] }
   0xf   :  { %v108_v54 = vld [vmem:[%s1461_s0 + $0xa0] sm:$0xff]  ;;  %v110_v62 = vld [vmem:[%s1461_s0 + $0xb0] sm:$0xff]  ;;  %v111_v2 = vld [vmem:[%s1461_s0 + $0xb8] sm:$0xff] }
  0x10   :  { %373 = vmatpush.msra.mxu1 %v47_v19  ;;  %v68_v13 = vld [vmem:[%s1465_s5 + $0x70] sm:$0xff]  ;;  %v67_v15 = vld [vmem:[%s1465_s5 + $0x68] sm:$0xff]  ;;  %v65_v17 = vld [vmem:[%s1465_s5 + $0x58] sm:$0xff] }
  0x11   :  { %815 = vmatmul.msk.f32.gmra.mxu0 %vm123_vm0, %v89_v5  ;;  %v114_v19 = vld [vmem:[%s1461_s0 + $0xd0] sm:$0xff] }
  0x12   :  { %374 = vmatpush.msra.mxu1 %v46_v20 }
  0x14   :  { %375 = vmatpush.msra.mxu1 %v45_v22 }
  0x16   :  { %376 = vmatpush.msra.mxu1 %v44_v23  ;;  %v63_v23 = vld [vmem:[%s1465_s5 + $0x48] sm:$0xff] }
  0x18   :  { %377 = vmatpush.msra.mxu1 %v43_v24  ;;  %v62_v24 = vld [vmem:[%s1465_s5 + $0x40] sm:$0xff] }
  0x19   :  { %816 = vmatmul.msk.f32.gmra.mxu0 %vm123_vm0, %v90_v6  ;;  %v112_v6 = vld [vmem:[%s1461_s0 + $0xc0] sm:$0xff] }
  0x1a   :  { %378 = vmatpush.msra.mxu1 %v42_v25  ;;  %v61_v25 = vld [vmem:[%s1465_s5 + $0x38] sm:$0xff] }
  0x1c   :  { %379 = vmatpush.msra.mxu1 %v41_v27  ;;  %v115_v27 = vld [vmem:[%s1461_s0 + $0xd8] sm:$0xff] }
  0x1e   :  { %380 = vmatpush.msra.mxu1 %v40_v28 }
  0x20   :  { %381 = vmatpush.msra.mxu1 %v39_v29  ;;  %v60_v29 = vld [vmem:[%s1465_s5 + $0x30] sm:$0xff] }
  0x21   :  { %817 = vmatmul.msk.f32.gmra.mxu0 %vm123_vm0, %v91_v7 }
  0x22   :  { %382 = vmatpush.msra.mxu1 %v38_v31  ;;  %v59_v31 = vld [vmem:[%s1465_s5 + $0x28] sm:$0xff] }
  0x24   :  { %383 = vmatpush.msra.mxu1 %v37_v32  ;;  %v58_v32 = vld [vmem:[%s1465_s5 + $0x20] sm:$0xff] }
  0x29   :  { %818 = vmatmul.msk.f32.gmra.mxu0 %vm123_vm0, %v92_v8 }
  0x31   :  { %819 = vmatmul.msk.f32.gmra.mxu0 %vm123_vm0, %v93_v9  ;;  %v69_v9 = vld [vmem:[%s1465_s5 + $0x78] sm:$0xff] }
  0x32   :  { %516 = vmatpush.msra.mxu2 %v69_v9 }
  0x34   :  { %517 = vmatpush.msra.mxu2 %v68_v13 }
  0x36   :  { %518 = vmatpush.msra.mxu2 %v67_v15 }
  0x39   :  { %820 = vmatmul.msk.f32.gmra.mxu0 %vm123_vm0, %v94_v10 }
  0x41   :  { %821 = vmatmul.msk.f32.gmra.mxu0 %vm123_vm0, %v95_v11  ;;  %v113_v11 = vld [vmem:[%s1461_s0 + $0xc8] sm:$0xff] }
  0x49   :  { %822 = vmatmul.msk.f32.gmra.mxu0 %vm123_vm0, %v96_v12 }
  0x51   :  { %823 = vmatmul.msk.f32.gmra.mxu0 %vm123_vm0, %v97_v16  ;;  %v66_v16 = vld [vmem:[%s1465_s5 + $0x60] sm:$0xff] }
  0x52   :  { %519 = vmatpush.msra.mxu2 %v66_v16 }
  0x54   :  { %520 = vmatpush.msra.mxu2 %v65_v17 }
  0x59   :  { %824 = vmatmul.msk.f32.gmra.mxu0 %vm123_vm0, %v98_v21  ;;  %v64_v21 = vld [vmem:[%s1465_s5 + $0x50] sm:$0xff] }
  0x5a   :  { %521 = vmatpush.msra.mxu2 %v64_v21 }
  0x5c   :  { %522 = vmatpush.msra.mxu2 %v63_v23 }
  0x5e   :  { %523 = vmatpush.msra.mxu2 %v62_v24 }
  0x60   :  { %524 = vmatpush.msra.mxu2 %v61_v25 }
  0x61   :  { %825 = vmatmul.msk.f32.gmra.mxu0 %vm123_vm0, %v99_v26 }
  0x62   :  { %525 = vmatpush.msra.mxu2 %v60_v29 }
  0x64   :  { %526 = vmatpush.msra.mxu2 %v59_v31 }
  0x66   :  { %527 = vmatpush.msra.mxu2 %v58_v32 }
  0x69   :  { %826 = vmatmul.msk.f32.gmra.mxu0 %vm123_vm0, %v100_v30 }
  0x71   :  { %827 = vmatmul.msk.f32.gmra.mxu0 %vm123_vm0, %v101_v33  ;;  %v57_v33 = vld [vmem:[%s1465_s5 + $0x18] sm:$0xff] }
  0x72   :  { %528 = vmatpush.msra.mxu2 %v57_v33 }
  0x79   :  { %828 = vmatmul.msk.f32.gmra.mxu0 %vm123_vm0, %v102_v34 }
  0x81   :  { %829 = vmatmul.msk.f32.gmra.mxu0 %vm123_vm0, %v103_v35  ;;  %v116_v35 = vld [vmem:[%s1461_s0 + $0xe0] sm:$0xff] }
  0x86   :  { %v237_v37 = vpop.f32.mrf.mxu0 }
  0x87   :  { %v238_v39 = vadd.f32 %v1027_v36, %v237_v37 }
  0x89   :  { %830 = vmatmul.msk.f32.gmra.mxu0 %vm123_vm0, %v104_v38  ;;  %v333_v40 = vmax.f32 %v238_v39, 0.0  ;;  %v56_v38 = vld [vmem:[%s1465_s5 + $0x10] sm:$0xff] }
  0x8a   :  { %529 = vmatpush.msra.mxu2 %v56_v38 }
  0x8b   :  { %384 = vmatmul.f32.vlgmr.msra.gmra.mxu1 %v333_v40  ;;  %v55_v40 = vld [vmem:[%s1465_s5 + $0x8] sm:$0xff] }
  0x8c   :  { %530 = vmatpush.msra.mxu2 %v55_v40 }
  0x8e   :  { %v240_v41 = vpop.f32.mrf.mxu0 }
  0x8f   :  { %v241_v43 = vadd.f32 %v1027_v36, %v240_v41  ;;  %v54_v41 = vld [vmem:[%s1465_s5] sm:$0xff] }
  0x90   :  { %531 = vmatpush.msra.mxu2 %v54_v41 }
  0x91   :  { %831 = vmatmul.msk.f32.gmra.mxu0 %vm123_vm0, %v105_v42  ;;  %v334_v44 = vmax.f32 %v241_v43, 0.0  ;;  %v117_v43 = vld [vmem:[%s1461_s0 + $0xe8] sm:$0xff] }
  0x93   :  { %387 = vmatmul.f32.gmra.mxu1 %v334_v44 }
  0x96   :  { %v243_v45 = vpop.f32.mrf.mxu0 }
  0x97   :  { %v244_v47 = vadd.f32 %v1027_v36, %v243_v45 }
  0x99   :  { %832 = vmatmul.msk.f32.gmra.mxu0 %vm123_vm0, %v106_v46  ;;  %v335_v48 = vmax.f32 %v244_v47, 0.0  ;;  %v118_v47 = vld [vmem:[%s1461_s0 + $0xf0] sm:$0xff] }
  0x9b   :  { %390 = vmatmul.f32.gmra.mxu1 %v335_v48 }
  0x9e   :  { %v246_v49 = vpop.f32.mrf.mxu0 }
  0x9f   :  { %v247_v51 = vadd.f32 %v1027_v36, %v246_v49 }
  0xa1   :  { %833 = vmatmul.msk.f32.gmra.mxu0 %vm123_vm0, %v107_v50  ;;  %v336_v52 = vmax.f32 %v247_v51, 0.0  ;;  %v119_v51 = vld [vmem:[%s1461_s0 + $0xf8] sm:$0xff] }
  0xa3   :  { %393 = vmatmul.f32.gmra.mxu1 %v336_v52 }
  0xa6   :  { %v249_v53 = vpop.f32.mrf.mxu0 }
  0xa7   :  { %v250_v55 = vadd.f32 %v1027_v36, %v249_v53 }
  0xa9   :  { %834 = vmatmul.msk.f32.gmra.mxu0 %vm123_vm0, %v108_v54  ;;  %v337_v56 = vmax.f32 %v250_v55, 0.0  ;;  %v1160_v54 = vld [vmem:[%s1464_s4] ss:$0 sm:$0xff] }
  0xab   :  { %396 = vmatmul.f32.gmra.mxu1 %v337_v56 }
  0xae   :  { %v252_v57 = vpop.f32.mrf.mxu0 }
  0xaf   :  { %v253_v59 = vadd.f32 %v1027_v36, %v252_v57 }
  0xb1   :  { %835 = vmatmul.msk.f32.gmra.mxu0 %vm123_vm0, %v109_v58  ;;  %v338_v60 = vmax.f32 %v253_v59, 0.0 }
  0xb3   :  { %399 = vmatmul.f32.gmra.mxu1 %v338_v60 }
  0xb6   :  { %v255_v61 = vpop.f32.mrf.mxu0 }
  0xb7   :  { %v256_v63 = vadd.f32 %v1027_v36, %v255_v61 }
  0xb9   :  { %836 = vmatmul.msk.f32.gmra.mxu0 %vm123_vm0, %v110_v62  ;;  %v339_v0 = vmax.f32 %v256_v63, 0.0 }
  0xbb   :  { %402 = vmatmul.f32.gmra.mxu1 %v339_v0 }
  0xbe   :  { %v258_v1 = vpop.f32.mrf.mxu0 }
  0xbf   :  { %v259_v3 = vadd.f32 %v1027_v36, %v258_v1 }
  0xc1   :  { %837 = vmatmul.msk.f32.gmra.mxu0 %vm123_vm0, %v111_v2  ;;  %v340_v4 = vmax.f32 %v259_v3, 0.0 }
  0xc3   :  { %405 = vmatmul.f32.gmra.mxu1 %v340_v4 }
  0xc6   :  { %v261_v5 = vpop.f32.mrf.mxu0 }
  0xc7   :  { %v262_v7 = vadd.f32 %v1027_v36, %v261_v5 }
  0xc9   :  { %v341_v8 = vmax.f32 %v262_v7, 0.0  ;;  %838 = vmatmul.msk.f32.gmra.mxu0 %vm123_vm0, %v112_v6 }
  0xcb   :  { %408 = vmatmul.f32.gmra.mxu1 %v341_v8 }
  0xce   :  { %v264_v10 = vpop.f32.mrf.mxu0 }
  0xcf   :  { %v265_v12 = vadd.f32 %v1027_v36, %v264_v10 }
  0xd1   :  { %v342_v14 = vmax.f32 %v265_v12, 0.0  ;;  %839 = vmatmul.msk.f32.gmra.mxu0 %vm123_vm0, %v113_v11 }
  0xd3   :  { %411 = vmatmul.f32.gmra.mxu1 %v342_v14 }
  0xd6   :  { %v267_v18 = vpop.f32.mrf.mxu0 }
  0xd7   :  { %v268_v20 = vadd.f32 %v1027_v36, %v267_v18 }
  0xd9   :  { %v343_v22 = vmax.f32 %v268_v20, 0.0  ;;  %840 = vmatmul.msk.f32.gmra.mxu0 %vm123_vm0, %v114_v19 }
  0xdb   :  { %414 = vmatmul.f32.gmra.mxu1 %v343_v22 }
  0xde   :  { %v270_v26 = vpop.f32.mrf.mxu0 }
  0xdf   :  { %v271_v28 = vadd.f32 %v1027_v36, %v270_v26 }
  0xe1   :  { %v344_v30 = vmax.f32 %v271_v28, 0.0  ;;  %841 = vmatmul.msk.f32.gmra.mxu0 %vm123_vm0, %v115_v27 }
  0xe3   :  { %417 = vmatmul.f32.gmra.mxu1 %v344_v30 }
  0xe6   :  { %v273_v34 = vpop.f32.mrf.mxu0 }
  0xe7   :  { %v274_v37 = vadd.f32 %v1027_v36, %v273_v34 }
  0xe9   :  { %v345_v39 = vmax.f32 %v274_v37, 0.0  ;;  %842 = vmatmul.msk.f32.gmra.mxu0 %vm123_vm0, %v116_v35 }
  0xeb   :  { %420 = vmatmul.f32.gmra.mxu1 %v345_v39 }
  0xee   :  { %v276_v42 = vpop.f32.mrf.mxu0 }
  0xef   :  { %v277_v44 = vadd.f32 %v1027_v36, %v276_v42 }
  0xf1   :  { %v346_v45 = vmax.f32 %v277_v44, 0.0  ;;  %843 = vmatmul.msk.f32.gmra.mxu0 %vm123_vm0, %v117_v43 }
  0xf3   :  { %423 = vmatmul.f32.gmra.mxu1 %v346_v45 }
  0xf6   :  { %v279_v46 = vpop.f32.mrf.mxu0 }
  0xf7   :  { %v280_v48 = vadd.f32 %v1027_v36, %v279_v46 }
  0xf9   :  { %v347_v49 = vmax.f32 %v280_v48, 0.0  ;;  %844 = vmatmul.msk.f32.gmra.mxu0 %vm123_vm0, %v118_v47 }
  0xfb   :  { %426 = vmatmul.f32.gmra.mxu1 %v347_v49 }
  0xfe   :  { %v282_v50 = vpop.f32.mrf.mxu0 }
  0xff   :  { %v283_v52 = vadd.f32 %v1027_v36, %v282_v50 }
 0x101   :  { %v348_v53 = vmax.f32 %v283_v52, 0.0  ;;  %845 = vmatmul.msk.f32.gmra.mxu0 %vm123_vm0, %v119_v51  ;;  %v86_v52 = vld [vmem:[%s1467_s7 + $0x78] sm:$0xff] }
 0x102   :  { %664 = vmatpush.msra.mxu3 %v86_v52 }
 0x103   :  { %429 = vmatmul.f32.gmra.mxu1 %v348_v53 }
 0x106   :  { %v285_v55 = vpop.f32.mrf.mxu0 }
 0x107   :  { %v286_v56 = vadd.f32 %v1027_v36, %v285_v55 }
 0x108   :  { %v385_v57 = vpop.f32.mrf.mxu1 }
 0x109   :  { %v349_v58 = vmax.f32 %v286_v56, 0.0  ;;  %v386_v59 = vadd.f32 %v1160_v54, %v385_v57  ;;  %v85_v56 = vld [vmem:[%s1467_s7 + $0x70] sm:$0xff] }
 0x10a   :  { %665 = vmatpush.msra.mxu3 %v85_v56 }
 0x10b   :  { %432 = vmatmul.f32.gmra.mxu1 %v349_v58  ;;  %v481_v60 = vmax.f32 %v386_v59, 0.0 }
 0x10d   :  { %532 = vmatmul.f32.vlgmr.msra.gmra.mxu2 %v481_v60  ;;  %v84_v60 = vld [vmem:[%s1467_s7 + $0x68] sm:$0xff] }
 0x10e   :  { %v288_v61 = vpop.f32.mrf.mxu0  ;;  %666 = vmatpush.msra.mxu3 %v84_v60 }
 0x10f   :  { %v289_v62 = vadd.f32 %v1027_v36, %v288_v61 }
 0x110   :  { %v388_v63 = vpop.f32.mrf.mxu1 }
 0x111   :  { %v350_v0 = vmax.f32 %v289_v62, 0.0  ;;  %v389_v1 = vadd.f32 %v1160_v54, %v388_v63  ;;  %v83_v62 = vld [vmem:[%s1467_s7 + $0x60] sm:$0xff]  ;;  %v82_v63 = vld [vmem:[%s1467_s7 + $0x58] sm:$0xff] }
 0x112   :  { %667 = vmatpush.msra.mxu3 %v83_v62 }
 0x113   :  { %435 = vmatmul.f32.gmra.mxu1 %v350_v0  ;;  %v482_v2 = vmax.f32 %v389_v1, 0.0 }
 0x114   :  { %668 = vmatpush.msra.mxu3 %v82_v63 }
 0x115   :  { %535 = vmatmul.f32.gmra.mxu2 %v482_v2  ;;  %v81_v2 = vld [vmem:[%s1467_s7 + $0x50] sm:$0xff] }
 0x116   :  { %v291_v3 = vpop.f32.mrf.mxu0  ;;  %669 = vmatpush.msra.mxu3 %v81_v2 }
 0x117   :  { %v292_v4 = vadd.f32 %v1027_v36, %v291_v3 }
 0x118   :  { %v391_v5 = vpop.f32.mrf.mxu1 }
 0x119   :  { %v351_v6 = vmax.f32 %v292_v4, 0.0  ;;  %v392_v7 = vadd.f32 %v1160_v54, %v391_v5 }
 0x11b   :  { %438 = vmatmul.f32.gmra.mxu1 %v351_v6  ;;  %v483_v8 = vmax.f32 %v392_v7, 0.0  ;;  %v80_v6 = vld [vmem:[%s1467_s7 + $0x48] sm:$0xff] }
 0x11c   :  { %670 = vmatpush.msra.mxu3 %v80_v6 }
 0x11d   :  { %538 = vmatmul.f32.gmra.mxu2 %v483_v8  ;;  %v79_v8 = vld [vmem:[%s1467_s7 + $0x40] sm:$0xff] }
 0x11e   :  { %v294_v9 = vpop.f32.mrf.mxu0  ;;  %671 = vmatpush.msra.mxu3 %v79_v8 }
 0x11f   :  { %v295_v10 = vadd.f32 %v1027_v36, %v294_v9  ;;  %v78_v9 = vld [vmem:[%s1467_s7 + $0x38] sm:$0xff] }
 0x120   :  { %v394_v11 = vpop.f32.mrf.mxu1  ;;  %672 = vmatpush.msra.mxu3 %v78_v9 }
 0x121   :  { %v352_v12 = vmax.f32 %v295_v10, 0.0  ;;  %v395_v13 = vadd.f32 %v1160_v54, %v394_v11 }
 0x123   :  { %441 = vmatmul.f32.gmra.mxu1 %v352_v12  ;;  %v484_v14 = vmax.f32 %v395_v13, 0.0  ;;  %v77_v12 = vld [vmem:[%s1467_s7 + $0x30] sm:$0xff] }
 0x124   :  { %673 = vmatpush.msra.mxu3 %v77_v12 }
 0x125   :  { %541 = vmatmul.f32.gmra.mxu2 %v484_v14 }
 0x126   :  { %v297_v15 = vpop.f32.mrf.mxu0 }
 0x127   :  { %v298_v16 = vadd.f32 %v1027_v36, %v297_v15 }
 0x128   :  { %v397_v17 = vpop.f32.mrf.mxu1 }
 0x129   :  { %v353_v18 = vmax.f32 %v298_v16, 0.0  ;;  %v398_v19 = vadd.f32 %v1160_v54, %v397_v17  ;;  %v76_v16 = vld [vmem:[%s1467_s7 + $0x28] sm:$0xff] }
 0x12a   :  { %674 = vmatpush.msra.mxu3 %v76_v16 }
 0x12b   :  { %444 = vmatmul.f32.gmra.mxu1 %v353_v18  ;;  %v485_v20 = vmax.f32 %v398_v19, 0.0  ;;  %v75_v18 = vld [vmem:[%s1467_s7 + $0x20] sm:$0xff]  ;;  %v74_v19 = vld [vmem:[%s1467_s7 + $0x18] sm:$0xff] }
 0x12c   :  { %675 = vmatpush.msra.mxu3 %v75_v18 }
 0x12d   :  { %544 = vmatmul.f32.gmra.mxu2 %v485_v20 }
 0x12e   :  { %v300_v21 = vpop.f32.mrf.mxu0  ;;  %676 = vmatpush.msra.mxu3 %v74_v19 }
 0x12f   :  { %v301_v22 = vadd.f32 %v1027_v36, %v300_v21 }
 0x130   :  { %v400_v23 = vpop.f32.mrf.mxu1 }
 0x131   :  { %v354_v24 = vmax.f32 %v301_v22, 0.0  ;;  %v401_v25 = vadd.f32 %v1160_v54, %v400_v23  ;;  %v73_v22 = vld [vmem:[%s1467_s7 + $0x10] sm:$0xff] }
 0x132   :  { %677 = vmatpush.msra.mxu3 %v73_v22 }
 0x133   :  { %447 = vmatmul.f32.gmra.mxu1 %v354_v24  ;;  %v486_v26 = vmax.f32 %v401_v25, 0.0 }
 0x135   :  { %547 = vmatmul.f32.gmra.mxu2 %v486_v26  ;;  %v72_v26 = vld [vmem:[%s1467_s7 + $0x8] sm:$0xff] }
 0x136   :  { %v303_v27 = vpop.f32.mrf.mxu0  ;;  %678 = vmatpush.msra.mxu3 %v72_v26 }
 0x137   :  { %v304_v28 = vadd.f32 %v1027_v36, %v303_v27 }
 0x138   :  { %v403_v29 = vpop.f32.mrf.mxu1 }
 0x139   :  { %v355_v30 = vmax.f32 %v304_v28, 0.0  ;;  %v404_v31 = vadd.f32 %v1160_v54, %v403_v29  ;;  %v71_v28 = vld [vmem:[%s1467_s7] sm:$0xff] }
 0x13a   :  { %679 = vmatpush.msra.mxu3 %v71_v28 }
 0x13b   :  { %450 = vmatmul.f32.gmra.mxu1 %v355_v30  ;;  %v487_v32 = vmax.f32 %v404_v31, 0.0 }
 0x13d   :  { %550 = vmatmul.f32.gmra.mxu2 %v487_v32 }
 0x13e   :  { %v306_v33 = vpop.f32.mrf.mxu0 }
 0x13f   :  { %v307_v34 = vadd.f32 %v1027_v36, %v306_v33 }
 0x140   :  { %v406_v35 = vpop.f32.mrf.mxu1 }
 0x141   :  { %v356_v37 = vmax.f32 %v307_v34, 0.0  ;;  %v407_v38 = vadd.f32 %v1160_v54, %v406_v35 }
 0x143   :  { %453 = vmatmul.f32.gmra.mxu1 %v356_v37  ;;  %v488_v39 = vmax.f32 %v407_v38, 0.0 }
 0x145   :  { %553 = vmatmul.f32.gmra.mxu2 %v488_v39 }
 0x146   :  { %v309_v40 = vpop.f32.mrf.mxu0 }
 0x147   :  { %v310_v41 = vadd.f32 %v1027_v36, %v309_v40 }
 0x148   :  { %v409_v42 = vpop.f32.mrf.mxu1 }
 0x149   :  { %v357_v43 = vmax.f32 %v310_v41, 0.0  ;;  %v410_v44 = vadd.f32 %v1160_v54, %v409_v42 }
 0x14b   :  { %v489_v45 = vmax.f32 %v410_v44, 0.0  ;;  %456 = vmatmul.f32.gmra.mxu1 %v357_v43 }
 0x14d   :  { %556 = vmatmul.f32.gmra.mxu2 %v489_v45  ;;  %v1246_v45 = vld [vmem:[%s1466_s6] ss:$0 sm:$0xff] }
 0x14e   :  { %v312_v46 = vpop.f32.mrf.mxu0 }
 0x14f   :  { %v313_v47 = vadd.f32 %v1027_v36, %v312_v46 }
 0x150   :  { %v412_v48 = vpop.f32.mrf.mxu1 }
 0x151   :  { %v358_v49 = vmax.f32 %v313_v47, 0.0  ;;  %v413_v50 = vadd.f32 %v1160_v54, %v412_v48 }
 0x153   :  { %v490_v51 = vmax.f32 %v413_v50, 0.0  ;;  %459 = vmatmul.f32.gmra.mxu1 %v358_v49 }
 0x155   :  { %559 = vmatmul.f32.gmra.mxu2 %v490_v51 }
 0x156   :  { %v315_v53 = vpop.f32.mrf.mxu0 }
 0x157   :  { %v316_v55 = vadd.f32 %v1027_v36, %v315_v53 }
 0x158   :  { %v415_v57 = vpop.f32.mrf.mxu1 }
 0x159   :  { %v359_v58 = vmax.f32 %v316_v55, 0.0  ;;  %v416_v59 = vadd.f32 %v1160_v54, %v415_v57 }
 0x15b   :  { %v491_v61 = vmax.f32 %v416_v59, 0.0  ;;  %462 = vmatmul.f32.gmra.mxu1 %v359_v58 }
 0x15d   :  { %562 = vmatmul.f32.gmra.mxu2 %v491_v61 }
 0x15e   :  { %v318_v0 = vpop.f32.mrf.mxu0 }
 0x15f   :  { %v319_v1 = vadd.f32 %v1027_v36, %v318_v0 }
 0x160   :  { %v418_v3 = vpop.f32.mrf.mxu1 }
 0x161   :  { %v360_v4 = vmax.f32 %v319_v1, 0.0  ;;  %v419_v5 = vadd.f32 %v1160_v54, %v418_v3 }
 0x163   :  { %v492_v7 = vmax.f32 %v419_v5, 0.0  ;;  %465 = vmatmul.f32.gmra.mxu1 %v360_v4 }
 0x165   :  { %565 = vmatmul.f32.gmra.mxu2 %v492_v7 }
 0x166   :  { %v321_v10 = vpop.f32.mrf.mxu0 }
 0x167   :  { %v322_v11 = vadd.f32 %v1027_v36, %v321_v10 }
 0x168   :  { %v421_v13 = vpop.f32.mrf.mxu1 }
 0x169   :  { %v361_v14 = vmax.f32 %v322_v11, 0.0  ;;  %v422_v15 = vadd.f32 %v1160_v54, %v421_v13 }
 0x16b   :  { %v493_v17 = vmax.f32 %v422_v15, 0.0  ;;  %468 = vmatmul.f32.gmra.mxu1 %v361_v14 }
 0x16d   :  { %568 = vmatmul.f32.gmra.mxu2 %v493_v17 }
 0x16e   :  { %v324_v20 = vpop.f32.mrf.mxu0 }
 0x16f   :  { %v325_v21 = vadd.f32 %v1027_v36, %v324_v20 }
 0x170   :  { %v424_v23 = vpop.f32.mrf.mxu1 }
 0x171   :  { %v362_v24 = vmax.f32 %v325_v21, 0.0  ;;  %v425_v25 = vadd.f32 %v1160_v54, %v424_v23 }
 0x173   :  { %v494_v27 = vmax.f32 %v425_v25, 0.0  ;;  %471 = vmatmul.f32.gmra.mxu1 %v362_v24 }
 0x175   :  { %571 = vmatmul.f32.gmra.mxu2 %v494_v27 }
 0x176   :  { %v327_v29 = vpop.f32.mrf.mxu0 }
 0x177   :  { %v328_v30 = vadd.f32 %v1027_v36, %v327_v29 }
 0x178   :  { %v427_v31 = vpop.f32.mrf.mxu1 }
 0x179   :  { %v363_v32 = vmax.f32 %v328_v30, 0.0  ;;  %v428_v33 = vadd.f32 %v1160_v54, %v427_v31 }
 0x17b   :  { %v495_v34 = vmax.f32 %v428_v33, 0.0  ;;  %474 = vmatmul.f32.gmra.mxu1 %v363_v32 }
 0x17d   :  { %574 = vmatmul.f32.gmra.mxu2 %v495_v34 }
 0x17e   :  { %v330_v35 = vpop.f32.mrf.mxu0 }
 0x17f   :  { %v331_v37 = vadd.f32 %v1027_v36, %v330_v35 }
 0x180   :  { %v430_v38 = vpop.f32.mrf.mxu1 }
 0x181   :  { %v364_v39 = vmax.f32 %v331_v37, 0.0  ;;  %v431_v40 = vadd.f32 %v1160_v54, %v430_v38 }
 0x183   :  { %v496_v41 = vmax.f32 %v431_v40, 0.0  ;;  %477 = vmatmul.f32.gmra.mxu1 %v364_v39 }
 0x185   :  { %577 = vmatmul.f32.gmra.mxu2 %v496_v41 }
 0x188   :  { %v433_v42 = vpop.f32.mrf.mxu1 }
 0x189   :  { %v434_v43 = vadd.f32 %v1160_v54, %v433_v42 }
 0x18b   :  { %v497_v44 = vmax.f32 %v434_v43, 0.0 }
 0x18d   :  { %580 = vmatmul.f32.gmra.mxu2 %v497_v44 }
 0x190   :  { %v436_v46 = vpop.f32.mrf.mxu1  ;;  %v533_v47 = vpop.f32.mrf.mxu2 }
 0x191   :  { %v437_v36 = vadd.f32 %v1160_v54, %v436_v46  ;;  %v534_v48 = vadd.f32 %v1246_v45, %v533_v47 }
 0x193   :  { %v498_v49 = vmax.f32 %v437_v36, 0.0  ;;  %v629_v50 = vmax.f32 %v534_v48, 0.0 }
 0x195   :  { %583 = vmatmul.f32.gmra.mxu2 %v498_v49  ;;  %680 = vmatmul.f32.vlgmr.msra.gmra.mxu3 %v629_v50 }
 0x198   :  { %v439_v51 = vpop.f32.mrf.mxu1  ;;  %v536_v52 = vpop.f32.mrf.mxu2 }
 0x199   :  { %v440_v53 = vadd.f32 %v1160_v54, %v439_v51  ;;  %v537_v55 = vadd.f32 %v1246_v45, %v536_v52 }
 0x19b   :  { %v499_v56 = vmax.f32 %v440_v53, 0.0  ;;  %v630_v57 = vmax.f32 %v537_v55, 0.0 }
 0x19d   :  { %586 = vmatmul.f32.gmra.mxu2 %v499_v56  ;;  %683 = vmatmul.f32.gmra.mxu3 %v630_v57 }
 0x1a0   :  { %v442_v58 = vpop.f32.mrf.mxu1  ;;  %v539_v59 = vpop.f32.mrf.mxu2 }
 0x1a1   :  { %v443_v60 = vadd.f32 %v1160_v54, %v442_v58  ;;  %v540_v61 = vadd.f32 %v1246_v45, %v539_v59 }
 0x1a3   :  { %v500_v62 = vmax.f32 %v443_v60, 0.0  ;;  %v631_v63 = vmax.f32 %v540_v61, 0.0 }
 0x1a5   :  { %589 = vmatmul.f32.gmra.mxu2 %v500_v62  ;;  %686 = vmatmul.f32.gmra.mxu3 %v631_v63 }
 0x1a8   :  { %v445_v0 = vpop.f32.mrf.mxu1  ;;  %v542_v1 = vpop.f32.mrf.mxu2 }
 0x1a9   :  { %v446_v2 = vadd.f32 %v1160_v54, %v445_v0  ;;  %v543_v3 = vadd.f32 %v1246_v45, %v542_v1 }
 0x1ab   :  { %v501_v4 = vmax.f32 %v446_v2, 0.0  ;;  %v632_v5 = vmax.f32 %v543_v3, 0.0 }
 0x1ad   :  { %592 = vmatmul.f32.gmra.mxu2 %v501_v4  ;;  %689 = vmatmul.f32.gmra.mxu3 %v632_v5 }
 0x1b0   :  { %v448_v6 = vpop.f32.mrf.mxu1  ;;  %v545_v7 = vpop.f32.mrf.mxu2 }
 0x1b1   :  { %v449_v8 = vadd.f32 %v1160_v54, %v448_v6  ;;  %v546_v9 = vadd.f32 %v1246_v45, %v545_v7 }
 0x1b3   :  { %v502_v10 = vmax.f32 %v449_v8, 0.0  ;;  %v633_v11 = vmax.f32 %v546_v9, 0.0 }
 0x1b5   :  { %595 = vmatmul.f32.gmra.mxu2 %v502_v10  ;;  %692 = vmatmul.f32.gmra.mxu3 %v633_v11 }
 0x1b8   :  { %v451_v12 = vpop.f32.mrf.mxu1  ;;  %v548_v13 = vpop.f32.mrf.mxu2 }
 0x1b9   :  { %v452_v14 = vadd.f32 %v1160_v54, %v451_v12  ;;  %v549_v15 = vadd.f32 %v1246_v45, %v548_v13 }
 0x1bb   :  { %v503_v16 = vmax.f32 %v452_v14, 0.0  ;;  %v634_v17 = vmax.f32 %v549_v15, 0.0 }
 0x1bd   :  { %598 = vmatmul.f32.gmra.mxu2 %v503_v16  ;;  %695 = vmatmul.f32.gmra.mxu3 %v634_v17 }
 0x1c0   :  { %v454_v18 = vpop.f32.mrf.mxu1  ;;  %v551_v19 = vpop.f32.mrf.mxu2 }
 0x1c1   :  { %v455_v20 = vadd.f32 %v1160_v54, %v454_v18  ;;  %v552_v21 = vadd.f32 %v1246_v45, %v551_v19 }
 0x1c3   :  { %v504_v22 = vmax.f32 %v455_v20, 0.0  ;;  %v635_v23 = vmax.f32 %v552_v21, 0.0 }
 0x1c5   :  { %601 = vmatmul.f32.gmra.mxu2 %v504_v22  ;;  %698 = vmatmul.f32.gmra.mxu3 %v635_v23 }
 0x1c8   :  { %v457_v24 = vpop.f32.mrf.mxu1  ;;  %v554_v25 = vpop.f32.mrf.mxu2 }
 0x1c9   :  { %v458_v26 = vadd.f32 %v1160_v54, %v457_v24  ;;  %v555_v27 = vadd.f32 %v1246_v45, %v554_v25 }
 0x1cb   :  { %v505_v28 = vmax.f32 %v458_v26, 0.0  ;;  %v636_v29 = vmax.f32 %v555_v27, 0.0 }
 0x1cd   :  { %604 = vmatmul.f32.gmra.mxu2 %v505_v28  ;;  %701 = vmatmul.f32.gmra.mxu3 %v636_v29 }
 0x1d0   :  { %v460_v30 = vpop.f32.mrf.mxu1  ;;  %v557_v31 = vpop.f32.mrf.mxu2 }
 0x1d1   :  { %v461_v32 = vadd.f32 %v1160_v54, %v460_v30  ;;  %v558_v33 = vadd.f32 %v1246_v45, %v557_v31 }
 0x1d3   :  { %v506_v34 = vmax.f32 %v461_v32, 0.0  ;;  %v637_v35 = vmax.f32 %v558_v33, 0.0 }
 0x1d5   :  { %607 = vmatmul.f32.gmra.mxu2 %v506_v34  ;;  %704 = vmatmul.f32.gmra.mxu3 %v637_v35 }
 0x1d8   :  { %v463_v37 = vpop.f32.mrf.mxu1  ;;  %v560_v38 = vpop.f32.mrf.mxu2 }
 0x1d9   :  { %v464_v39 = vadd.f32 %v1160_v54, %v463_v37  ;;  %v561_v40 = vadd.f32 %v1246_v45, %v560_v38 }
 0x1db   :  { %v507_v41 = vmax.f32 %v464_v39, 0.0  ;;  %v638_v42 = vmax.f32 %v561_v40, 0.0 }
 0x1dd   :  { %610 = vmatmul.f32.gmra.mxu2 %v507_v41  ;;  %707 = vmatmul.f32.gmra.mxu3 %v638_v42 }
 0x1e0   :  { %v466_v43 = vpop.f32.mrf.mxu1  ;;  %v563_v44 = vpop.f32.mrf.mxu2 }
 0x1e1   :  { %v467_v46 = vadd.f32 %v1160_v54, %v466_v43  ;;  %v564_v47 = vadd.f32 %v1246_v45, %v563_v44 }
 0x1e3   :  { %v508_v36 = vmax.f32 %v467_v46, 0.0  ;;  %v639_v48 = vmax.f32 %v564_v47, 0.0 }
 0x1e5   :  { %613 = vmatmul.f32.gmra.mxu2 %v508_v36  ;;  %710 = vmatmul.f32.gmra.mxu3 %v639_v48 }
 0x1e8   :  { %v469_v49 = vpop.f32.mrf.mxu1  ;;  %v566_v50 = vpop.f32.mrf.mxu2 }
 0x1e9   :  { %v470_v51 = vadd.f32 %v1160_v54, %v469_v49  ;;  %v567_v52 = vadd.f32 %v1246_v45, %v566_v50 }
 0x1eb   :  { %v509_v53 = vmax.f32 %v470_v51, 0.0  ;;  %v640_v55 = vmax.f32 %v567_v52, 0.0 }
 0x1ed   :  { %616 = vmatmul.f32.gmra.mxu2 %v509_v53  ;;  %713 = vmatmul.f32.gmra.mxu3 %v640_v55 }
 0x1f0   :  { %v472_v56 = vpop.f32.mrf.mxu1  ;;  %v569_v57 = vpop.f32.mrf.mxu2 }
 0x1f1   :  { %v473_v58 = vadd.f32 %v1160_v54, %v472_v56  ;;  %v570_v59 = vadd.f32 %v1246_v45, %v569_v57 }
 0x1f3   :  { %v510_v60 = vmax.f32 %v473_v58, 0.0  ;;  %v641_v61 = vmax.f32 %v570_v59, 0.0 }
 0x1f5   :  { %619 = vmatmul.f32.gmra.mxu2 %v510_v60  ;;  %716 = vmatmul.f32.gmra.mxu3 %v641_v61 }
 0x1f8   :  { %v475_v62 = vpop.f32.mrf.mxu1  ;;  %v572_v63 = vpop.f32.mrf.mxu2 }
 0x1f9   :  { %v476_v0 = vadd.f32 %v1160_v54, %v475_v62  ;;  %v573_v1 = vadd.f32 %v1246_v45, %v572_v63 }
 0x1fb   :  { %v511_v2 = vmax.f32 %v476_v0, 0.0  ;;  %v642_v3 = vmax.f32 %v573_v1, 0.0 }
 0x1fd   :  { %622 = vmatmul.f32.gmra.mxu2 %v511_v2  ;;  %719 = vmatmul.f32.gmra.mxu3 %v642_v3 }
 0x200   :  { %v478_v4 = vpop.f32.mrf.mxu1  ;;  %v575_v5 = vpop.f32.mrf.mxu2 }
 0x201   :  { %v479_v6 = vadd.f32 %v1160_v54, %v478_v4  ;;  %v576_v7 = vadd.f32 %v1246_v45, %v575_v5  ;;  %v1283_v54 = vld [vmem:[%s1468_s8] ss:$0 sm:$0xff] }
 0x203   :  { %v512_v8 = vmax.f32 %v479_v6, 0.0  ;;  %v643_v9 = vmax.f32 %v576_v7, 0.0 }
 0x205   :  { %625 = vmatmul.f32.gmra.mxu2 %v512_v8  ;;  %722 = vmatmul.f32.gmra.mxu3 %v643_v9 }
 0x208   :  { %v578_v10 = vpop.f32.mrf.mxu2 }
 0x209   :  { %v579_v11 = vadd.f32 %v1246_v45, %v578_v10 }
 0x20b   :  { %v644_v12 = vmax.f32 %v579_v11, 0.0 }
 0x20d   :  { %725 = vmatmul.f32.gmra.mxu3 %v644_v12 }
 0x210   :  { %v581_v13 = vpop.f32.mrf.mxu2 }
 0x211   :  { %v582_v14 = vadd.f32 %v1246_v45, %v581_v13 }
 0x213   :  { %v645_v15 = vmax.f32 %v582_v14, 0.0 }
 0x215   :  { %728 = vmatmul.f32.gmra.mxu3 %v645_v15 }
 0x218   :  { %v584_v16 = vpop.f32.mrf.mxu2  ;;  %v681_v17 = vpop.f32.mrf.mxu3 }
 0x219   :  { %v585_v18 = vadd.f32 %v1246_v45, %v584_v16  ;;  %v682_v19 = vadd.f32 %v1283_v54, %v681_v17 }
 0x21b   :  { %v646_v20 = vmax.f32 %v585_v18, 0.0  ;;  %778 = vst.msk [vmem:[%s1469_s9] sm:$0xff] %vm777_vm1, %v682_v19 }
 0x21d   :  { %731 = vmatmul.f32.gmra.mxu3 %v646_v20 }
 0x220   :  { %v587_v21 = vpop.f32.mrf.mxu2  ;;  %v684_v22 = vpop.f32.mrf.mxu3 }
 0x221   :  { %v588_v23 = vadd.f32 %v1246_v45, %v587_v21  ;;  %v685_v24 = vadd.f32 %v1283_v54, %v684_v22 }
 0x223   :  { %v647_v25 = vmax.f32 %v588_v23, 0.0  ;;  %779 = vst.msk [vmem:[%s1469_s9 + $0x8] sm:$0xff] %vm777_vm1, %v685_v24 }
 0x225   :  { %734 = vmatmul.f32.gmra.mxu3 %v647_v25 }
 0x228   :  { %v590_v26 = vpop.f32.mrf.mxu2  ;;  %v687_v27 = vpop.f32.mrf.mxu3 }
 0x229   :  { %v591_v28 = vadd.f32 %v1246_v45, %v590_v26  ;;  %v688_v29 = vadd.f32 %v1283_v54, %v687_v27 }
 0x22b   :  { %v648_v30 = vmax.f32 %v591_v28, 0.0  ;;  %780 = vst.msk [vmem:[%s1469_s9 + $0x10] sm:$0xff] %vm777_vm1, %v688_v29 }
 0x22d   :  { %737 = vmatmul.f32.gmra.mxu3 %v648_v30 }
 0x230   :  { %v593_v31 = vpop.f32.mrf.mxu2  ;;  %v690_v32 = vpop.f32.mrf.mxu3 }
 0x231   :  { %v594_v33 = vadd.f32 %v1246_v45, %v593_v31  ;;  %v691_v34 = vadd.f32 %v1283_v54, %v690_v32 }
 0x233   :  { %v649_v35 = vmax.f32 %v594_v33, 0.0  ;;  %781 = vst.msk [vmem:[%s1469_s9 + $0x18] sm:$0xff] %vm777_vm1, %v691_v34 }
 0x235   :  { %740 = vmatmul.f32.gmra.mxu3 %v649_v35 }
 0x238   :  { %v596_v37 = vpop.f32.mrf.mxu2  ;;  %v693_v38 = vpop.f32.mrf.mxu3 }
 0x239   :  { %v597_v39 = vadd.f32 %v1246_v45, %v596_v37  ;;  %v694_v40 = vadd.f32 %v1283_v54, %v693_v38 }
 0x23b   :  { %v650_v41 = vmax.f32 %v597_v39, 0.0  ;;  %782 = vst.msk [vmem:[%s1469_s9 + $0x20] sm:$0xff] %vm777_vm1, %v694_v40 }
 0x23d   :  { %743 = vmatmul.f32.gmra.mxu3 %v650_v41 }
 0x240   :  { %v599_v42 = vpop.f32.mrf.mxu2  ;;  %v696_v43 = vpop.f32.mrf.mxu3 }
 0x241   :  { %v600_v44 = vadd.f32 %v1246_v45, %v599_v42  ;;  %v697_v46 = vadd.f32 %v1283_v54, %v696_v43 }
 0x243   :  { %v651_v47 = vmax.f32 %v600_v44, 0.0  ;;  %783 = vst.msk [vmem:[%s1469_s9 + $0x28] sm:$0xff] %vm777_vm1, %v697_v46 }
 0x245   :  { %746 = vmatmul.f32.gmra.mxu3 %v651_v47 }
 0x248   :  { %v602_v36 = vpop.f32.mrf.mxu2  ;;  %v699_v48 = vpop.f32.mrf.mxu3 }
 0x249   :  { %v603_v49 = vadd.f32 %v1246_v45, %v602_v36  ;;  %v700_v50 = vadd.f32 %v1283_v54, %v699_v48 }
 0x24b   :  { %v652_v51 = vmax.f32 %v603_v49, 0.0  ;;  %784 = vst.msk [vmem:[%s1469_s9 + $0x30] sm:$0xff] %vm777_vm1, %v700_v50 }
 0x24d   :  { %749 = vmatmul.f32.gmra.mxu3 %v652_v51 }
 0x250   :  { %v605_v52 = vpop.f32.mrf.mxu2  ;;  %v702_v53 = vpop.f32.mrf.mxu3 }
 0x251   :  { %v606_v55 = vadd.f32 %v1246_v45, %v605_v52  ;;  %v703_v56 = vadd.f32 %v1283_v54, %v702_v53 }
 0x253   :  { %v653_v57 = vmax.f32 %v606_v55, 0.0  ;;  %785 = vst.msk [vmem:[%s1469_s9 + $0x38] sm:$0xff] %vm777_vm1, %v703_v56 }
 0x255   :  { %752 = vmatmul.f32.gmra.mxu3 %v653_v57 }
 0x258   :  { %v608_v58 = vpop.f32.mrf.mxu2  ;;  %v705_v59 = vpop.f32.mrf.mxu3 }
 0x259   :  { %v609_v60 = vadd.f32 %v1246_v45, %v608_v58  ;;  %v706_v61 = vadd.f32 %v1283_v54, %v705_v59 }
 0x25b   :  { %v654_v62 = vmax.f32 %v609_v60, 0.0  ;;  %786 = vst.msk [vmem:[%s1469_s9 + $0x40] sm:$0xff] %vm777_vm1, %v706_v61 }
 0x25d   :  { %755 = vmatmul.f32.gmra.mxu3 %v654_v62 }
 0x260   :  { %v611_v63 = vpop.f32.mrf.mxu2  ;;  %v708_v0 = vpop.f32.mrf.mxu3 }
 0x261   :  { %v612_v1 = vadd.f32 %v1246_v45, %v611_v63  ;;  %v709_v2 = vadd.f32 %v1283_v54, %v708_v0 }
 0x263   :  { %v655_v3 = vmax.f32 %v612_v1, 0.0  ;;  %787 = vst.msk [vmem:[%s1469_s9 + $0x48] sm:$0xff] %vm777_vm1, %v709_v2 }
 0x265   :  { %758 = vmatmul.f32.gmra.mxu3 %v655_v3 }
 0x268   :  { %v614_v4 = vpop.f32.mrf.mxu2  ;;  %v711_v5 = vpop.f32.mrf.mxu3 }
 0x269   :  { %v615_v6 = vadd.f32 %v1246_v45, %v614_v4  ;;  %v712_v7 = vadd.f32 %v1283_v54, %v711_v5 }
 0x26b   :  { %v656_v8 = vmax.f32 %v615_v6, 0.0  ;;  %788 = vst.msk [vmem:[%s1469_s9 + $0x50] sm:$0xff] %vm777_vm1, %v712_v7 }
 0x26d   :  { %761 = vmatmul.f32.gmra.mxu3 %v656_v8 }
 0x270   :  { %v617_v9 = vpop.f32.mrf.mxu2  ;;  %v714_v10 = vpop.f32.mrf.mxu3 }
 0x271   :  { %v618_v11 = vadd.f32 %v1246_v45, %v617_v9  ;;  %v715_v12 = vadd.f32 %v1283_v54, %v714_v10 }
 0x273   :  { %v657_v13 = vmax.f32 %v618_v11, 0.0  ;;  %789 = vst.msk [vmem:[%s1469_s9 + $0x58] sm:$0xff] %vm777_vm1, %v715_v12 }
 0x275   :  { %764 = vmatmul.f32.gmra.mxu3 %v657_v13 }
 0x278   :  { %v620_v14 = vpop.f32.mrf.mxu2  ;;  %v717_v15 = vpop.f32.mrf.mxu3 }
 0x279   :  { %v621_v16 = vadd.f32 %v1246_v45, %v620_v14  ;;  %v718_v17 = vadd.f32 %v1283_v54, %v717_v15 }
 0x27b   :  { %v658_v18 = vmax.f32 %v621_v16, 0.0  ;;  %790 = vst.msk [vmem:[%s1469_s9 + $0x60] sm:$0xff] %vm777_vm1, %v718_v17 }
 0x27d   :  { %767 = vmatmul.f32.gmra.mxu3 %v658_v18 }
 0x280   :  { %v623_v19 = vpop.f32.mrf.mxu2  ;;  %v720_v20 = vpop.f32.mrf.mxu3 }
 0x281   :  { %v624_v21 = vadd.f32 %v1246_v45, %v623_v19  ;;  %v721_v22 = vadd.f32 %v1283_v54, %v720_v20 }
 0x283   :  { %v659_v23 = vmax.f32 %v624_v21, 0.0  ;;  %791 = vst.msk [vmem:[%s1469_s9 + $0x68] sm:$0xff] %vm777_vm1, %v721_v22 }
 0x285   :  { %770 = vmatmul.f32.gmra.mxu3 %v659_v23 }
 0x288   :  { %v626_v24 = vpop.f32.mrf.mxu2  ;;  %v723_v25 = vpop.f32.mrf.mxu3 }
 0x289   :  { %v627_v26 = vadd.f32 %v1246_v45, %v626_v24  ;;  %v724_v27 = vadd.f32 %v1283_v54, %v723_v25 }
 0x28b   :  { %v660_v28 = vmax.f32 %v627_v26, 0.0  ;;  %792 = vst.msk [vmem:[%s1469_s9 + $0x70] sm:$0xff] %vm777_vm1, %v724_v27 }
 0x28d   :  { %773 = vmatmul.f32.gmra.mxu3 %v660_v28 }
 0x290   :  { %v726_v29 = vpop.f32.mrf.mxu3 }
 0x291   :  { %v727_v30 = vadd.f32 %v1283_v54, %v726_v29 }
 0x293   :  { %793 = vst.msk [vmem:[%s1469_s9 + $0x78] sm:$0xff] %vm777_vm1, %v727_v30 }
 0x298   :  { %v729_v31 = vpop.f32.mrf.mxu3 }
 0x299   :  { %v730_v45 = vadd.f32 %v1283_v54, %v729_v31 }
 0x29b   :  { %794 = vst.msk [vmem:[%s1469_s9 + $0x80] sm:$0xff] %vm777_vm1, %v730_v45 }
 0x2a0   :  { %v732_v32 = vpop.f32.mrf.mxu3 }
 0x2a1   :  { %v733_v33 = vadd.f32 %v1283_v54, %v732_v32 }
 0x2a3   :  { %795 = vst.msk [vmem:[%s1469_s9 + $0x88] sm:$0xff] %vm777_vm1, %v733_v33 }
 0x2a8   :  { %v735_v34 = vpop.f32.mrf.mxu3 }
 0x2a9   :  { %v736_v35 = vadd.f32 %v1283_v54, %v735_v34 }
 0x2ab   :  { %796 = vst.msk [vmem:[%s1469_s9 + $0x90] sm:$0xff] %vm777_vm1, %v736_v35 }
 0x2b0   :  { %v738_v37 = vpop.f32.mrf.mxu3 }
 0x2b1   :  { %v739_v38 = vadd.f32 %v1283_v54, %v738_v37 }
 0x2b3   :  { %797 = vst.msk [vmem:[%s1469_s9 + $0x98] sm:$0xff] %vm777_vm1, %v739_v38 }
 0x2b8   :  { %v741_v39 = vpop.f32.mrf.mxu3 }
 0x2b9   :  { %v742_v40 = vadd.f32 %v1283_v54, %v741_v39 }
 0x2bb   :  { %798 = vst.msk [vmem:[%s1469_s9 + $0xa0] sm:$0xff] %vm777_vm1, %v742_v40 }
 0x2c0   :  { %v744_v41 = vpop.f32.mrf.mxu3 }
 0x2c1   :  { %v745_v42 = vadd.f32 %v1283_v54, %v744_v41 }
 0x2c3   :  { %799 = vst.msk [vmem:[%s1469_s9 + $0xa8] sm:$0xff] %vm777_vm1, %v745_v42 }
 0x2c8   :  { %v747_v43 = vpop.f32.mrf.mxu3 }
 0x2c9   :  { %v748_v44 = vadd.f32 %v1283_v54, %v747_v43 }
 0x2cb   :  { %800 = vst.msk [vmem:[%s1469_s9 + $0xb0] sm:$0xff] %vm777_vm1, %v748_v44 }
 0x2d0   :  { %v750_v46 = vpop.f32.mrf.mxu3 }
 0x2d1   :  { %v751_v47 = vadd.f32 %v1283_v54, %v750_v46 }
 0x2d3   :  { %801 = vst.msk [vmem:[%s1469_s9 + $0xb8] sm:$0xff] %vm777_vm1, %v751_v47 }
 0x2d8   :  { %v753_v36 = vpop.f32.mrf.mxu3 }
 0x2d9   :  { %v754_v48 = vadd.f32 %v1283_v54, %v753_v36 }
 0x2db   :  { %802 = vst.msk [vmem:[%s1469_s9 + $0xc0] sm:$0xff] %vm777_vm1, %v754_v48 }
 0x2e0   :  { %v756_v49 = vpop.f32.mrf.mxu3 }
 0x2e1   :  { %v757_v50 = vadd.f32 %v1283_v54, %v756_v49 }
 0x2e3   :  { %803 = vst.msk [vmem:[%s1469_s9 + $0xc8] sm:$0xff] %vm777_vm1, %v757_v50 }
 0x2e8   :  { %v759_v51 = vpop.f32.mrf.mxu3 }
 0x2e9   :  { %v760_v52 = vadd.f32 %v1283_v54, %v759_v51 }
 0x2eb   :  { %804 = vst.msk [vmem:[%s1469_s9 + $0xd0] sm:$0xff] %vm777_vm1, %v760_v52 }
 0x2f0   :  { %v762_v53 = vpop.f32.mrf.mxu3 }
 0x2f1   :  { %v763_v55 = vadd.f32 %v1283_v54, %v762_v53 }
 0x2f3   :  { %805 = vst.msk [vmem:[%s1469_s9 + $0xd8] sm:$0xff] %vm777_vm1, %v763_v55 }
 0x2f8   :  { %v765_v56 = vpop.f32.mrf.mxu3 }
 0x2f9   :  { %v766_v57 = vadd.f32 %v1283_v54, %v765_v56 }
 0x2fb   :  { %806 = vst.msk [vmem:[%s1469_s9 + $0xe0] sm:$0xff] %vm777_vm1, %v766_v57 }
 0x300   :  { %v768_v58 = vpop.f32.mrf.mxu3 }
 0x301   :  { %v769_v59 = vadd.f32 %v1283_v54, %v768_v58 }
 0x303   :  { %807 = vst.msk [vmem:[%s1469_s9 + $0xe8] sm:$0xff] %vm777_vm1, %v769_v59 }
 0x308   :  { %v771_v60 = vpop.f32.mrf.mxu3 }
 0x309   :  { %v772_v61 = vadd.f32 %v1283_v54, %v771_v60 }
 0x30b   :  { %808 = vst.msk [vmem:[%s1469_s9 + $0xf0] sm:$0xff] %vm777_vm1, %v772_v61 }
 0x310   :  { %v774_v62 = vpop.f32.mrf.mxu3 }
 0x311   :  { %v775_v63 = vadd.f32 %v1283_v54, %v774_v62 }
 0x313   :  { %809 = vst.msk [vmem:[%s1469_s9 + $0xf8] sm:$0xff] %vm777_vm1, %v775_v63 }

</bundles_post_ra>
